<compile_context>
chip_gen: v7x
topology: tpu7x:2x2x1
jax: 0.10.0
libtpu: 0.0.40
codegen_flags: <defaults>
</compile_context>

<pallas_src>
import functools

import jax
import jax.numpy as jnp
import numpy as np
from jax.experimental import pallas as pl
from jax.experimental.pallas import tpu as pltpu


# --------------------------------------------------------------------------
# Fused decoder kernel: grid = (batch_blocks, layer)
# --------------------------------------------------------------------------
def decoder_kernel(x_ref, wqkv_ref, wo_ref, w1_ref, w2_ref, vecs_ref,
                   wp_ref, bp_ref, o_ref, act_ref, *, num_heads):
    """One FFTransformer layer for Bt batch elements; layers chained in VMEM."""
    layer = pl.program_id(1)
    n_layers = pl.num_programs(1)

    Bt, T, C = x_ref.shape
    N = Bt * T
    H = w1_ref.shape[-1]
    dh = C // num_heads

    # Load the input activation into the resident VMEM carry on the first layer.
    @pl.when(layer == 0)
    def _():
        act_ref[...] = x_ref[...].reshape(N, C).astype(jnp.float32)

    x = act_ref[...]                                   # [N, C] f32

    # Packed per-layer vectors (one DMA): rows are
    # 0 bqkv(3C, q-scaled) 1 bo(C) 2 g1(C) 3 b1(C) 4 cb1(H) 5 cb2(C) 6 g2(C) 7 b2(C)
    vec = vecs_ref[0]                                  # [8, Wv]
    bqkv = vec[0:1, :3 * C]
    bo = vec[1:2, :C]
    g1 = vec[2:3, :C]
    b1 = vec[3:4, :C]
    cb1 = vec[4:5, :H]
    cb2 = vec[5:6, :C]
    g2 = vec[6:7, :C]
    b2 = vec[7:8, :C]

    # Conv boundary masks: rows at t==0 / t==T-1 inside each batch element.
    row = jax.lax.broadcasted_iota(jnp.int32, (N, 1), 0)
    first = functools.reduce(jnp.logical_or, [row == b * T for b in range(Bt)])
    last = functools.reduce(jnp.logical_or,
                            [row == b * T + T - 1 for b in range(Bt)])

    # ---- multi-head self attention (torch nn.MultiheadAttention semantics) --
    # 1/sqrt(dh) scale is pre-folded into wqkv / bqkv q columns.
    x_bf = x.astype(jnp.bfloat16)
    qkv = jnp.dot(x_bf, wqkv_ref[0],
                  preferred_element_type=jnp.float32) + bqkv      # [N, 3C]
    q = qkv[:, :C]
    k = qkv[:, C:2 * C]
    v = qkv[:, 2 * C:]

    # TODO(synk): for long sequences on v7x, switch to flash-style KV/query
    # tiling (online softmax) with a query-tile parallel grid axis so the
    # [T,T] scores fit the 64 MiB VMEM and both TensorCores stay busy.
    # TODO(synk): if dh % 128 != 0 at production shapes, pad each head block
    # to a 128-lane multiple inside the packed wqkv/wo so head slices are free.
    outs = []
    for b in range(Bt):
        r0 = b * T
        head_ctx = []
        for h in range(num_heads):
            lo, hi = h * dh, (h + 1) * dh
            qh = q[r0:r0 + T, lo:hi].astype(jnp.bfloat16)
            kh = k[r0:r0 + T, lo:hi].astype(jnp.bfloat16)
            vh = v[r0:r0 + T, lo:hi].astype(jnp.bfloat16)
            # Contract on dim 1 of both operands -> no explicit kh.T relayout.
            s = jax.lax.dot_general(qh, kh, (((1,), (1,)), ((), ())),
                                    preferred_element_type=jnp.float32)  # [T, T]
            s = s - jnp.max(s, axis=-1, keepdims=True)
            p = jnp.exp(s)
            inv = pl.reciprocal(jnp.sum(p, axis=-1, keepdims=True), approx=True)
            p = p * inv
            head_ctx.append(jnp.dot(p.astype(jnp.bfloat16), vh,
                                    preferred_element_type=jnp.float32))
        outs.append(jnp.concatenate(head_ctx, axis=-1))            # [T, C]
    heads_cat = jnp.concatenate(outs, axis=0)                      # [N, C]
    attn = jnp.dot(heads_cat.astype(jnp.bfloat16), wo_ref[0],
                   preferred_element_type=jnp.float32) + bo

    # ---- residual + LayerNorm1 ----
    y = x + attn
    mu = jnp.mean(y, axis=-1, keepdims=True)
    var = jnp.mean((y - mu) ** 2, axis=-1, keepdims=True)
    y = (y - mu) * jax.lax.rsqrt(var + 1e-5) * g1 + b1

    # ---- FFN: Conv1d(k=3, pad=1) -> ReLU -> Conv1d(k=3, pad=1) ----
    # Conv1: input-side taps (concat is only [N, 3C]).  Rolls on the XLU;
    # boundary rows masked (Conv1d zero padding; also blocks cross-batch leak).
    y_prev = jnp.where(first, 0.0, pltpu.roll(y, shift=1, axis=0))
    y_next = jnp.where(last, 0.0, pltpu.roll(y, shift=N - 1, axis=0))
    y3 = jnp.concatenate([y_prev, y, y_next], axis=-1).astype(jnp.bfloat16)
    h1 = jnp.dot(y3, w1_ref[0], preferred_element_type=jnp.float32) + cb1
    h1 = jnp.maximum(h1, 0.0)

    # Conv2: output-side taps -> no [N, 3H] concat, rolls shrink to [N, C].
    u = jnp.dot(h1.astype(jnp.bfloat16), w2_ref[0],
                preferred_element_type=jnp.float32)                # [N, 3C]
    u_prev = jnp.where(first, 0.0, pltpu.roll(u[:, :C], shift=1, axis=0))
    u_next = jnp.where(last, 0.0, pltpu.roll(u[:, 2 * C:], shift=N - 1, axis=0))
    ffn = u[:, C:2 * C] + u_prev + u_next + cb2
    # dropout layers are identity in eval mode.

    # ---- residual + LayerNorm2 ----
    z = y + ffn
    mu2 = jnp.mean(z, axis=-1, keepdims=True)
    var2 = jnp.mean((z - mu2) ** 2, axis=-1, keepdims=True)
    z = (z - mu2) * jax.lax.rsqrt(var2 + 1e-5) * g2 + b2

    act_ref[...] = z                                   # carry to next layer

    # ---- postnet (1x1 Conv1d) fused at the last layer; lane-dense output ----
    @pl.when(layer == n_layers - 1)
    def _():
        o = jnp.dot(z.astype(jnp.bfloat16), wp_ref[...],
                    preferred_element_type=jnp.float32) + bp_ref[...]
        o_ref[...] = o.reshape(o_ref.shape).astype(o_ref.dtype)


# --------------------------------------------------------------------------
# Wrapper (pallas_call plumbing)
# --------------------------------------------------------------------------
def fftransformer_decoder(x_bct, params, num_heads, batch_block=None,
                          vmem_limit_bytes=None):
    """x_bct: [B, C_in, T] (PyTorch layout). Returns [B, C_out, T].

    batch_block (Bt): batch elements per grid step.  Size it so
    Bt * (activation + attention/FFN intermediates) fits the scoped VMEM
    budget (64 MiB physical on v7x, 128 MiB on v5e/v6e).
    vmem_limit_bytes: at production shapes (T>=1024, H_ffn=1024) set this
    explicitly — v5e's default scoped limit is 16 MiB, v7x's is 32 of 64 MiB.
    """
    B, C, T = x_bct.shape
    x_btc = jnp.transpose(x_bct, (0, 2, 1))            # [B, T, C]
    L = params["wqkv"].shape[0]
    H = params["w1"].shape[-1]
    Wv = params["vecs"].shape[-1]
    Coutp = params["wp"].shape[-1]                     # 128-padded
    Cout = params["out_channels"]

    if batch_block is None:
        batch_block = next(bt for bt in (8, 4, 2, 1) if B % bt == 0)
    Bt = batch_block
    assert B % Bt == 0, "batch_block must divide batch size"

    kernel = functools.partial(decoder_kernel, num_heads=num_heads)

    cp_kwargs = dict(dimension_semantics=("parallel", "arbitrary"))
    if vmem_limit_bytes is not None:
        cp_kwargs["vmem_limit_bytes"] = vmem_limit_bytes

    out = pl.pallas_call(
        kernel,
        out_shape=jax.ShapeDtypeStruct((B, T, Coutp), x_btc.dtype),
        grid=(B // Bt, L),
        in_specs=[
            pl.BlockSpec((Bt, T, C), lambda b, l: (b, 0, 0)),        # x
            pl.BlockSpec((1, C, 3 * C), lambda b, l: (l, 0, 0)),     # wqkv (bf16)
            pl.BlockSpec((1, C, C), lambda b, l: (l, 0, 0)),         # wo   (bf16)
            pl.BlockSpec((1, 3 * C, H), lambda b, l: (l, 0, 0)),     # w1   (bf16)
            pl.BlockSpec((1, H, 3 * C), lambda b, l: (l, 0, 0)),     # w2 packed (bf16)
            pl.BlockSpec((1, 8, Wv), lambda b, l: (l, 0, 0)),        # packed vectors
            pl.BlockSpec((C, Coutp), lambda b, l: (0, 0)),           # postnet w
            pl.BlockSpec((1, Coutp), lambda b, l: (0, 0)),           # postnet b
        ],
        out_specs=pl.BlockSpec((Bt, T, Coutp), lambda b, l: (b, 0, 0)),
        scratch_shapes=[pltpu.VMEM((Bt * T, C), jnp.float32)],       # layer carry
        compiler_params=pltpu.CompilerParams(**cp_kwargs),
    )(x_btc, params["wqkv"], params["wo"], params["w1"], params["w2"],
      params["vecs"], params["wp"], params["bp"])

    out = out[:, :, :Cout]                              # drop lane padding
    return jnp.transpose(out, (0, 2, 1))                # [B, C_out, T]
    # TODO(synk): x_mask is assumed None (multiply-by-1 path of the module);
    # a real mask would need attention/conv/LN masking inside the kernel.


# --------------------------------------------------------------------------
# Parameter initialization: raw torch-shaped params + kernel-packed params.
# Matmul weights are rounded through bf16 once so the kernel (bf16) and the
# f32 reference share identical weight values.
# --------------------------------------------------------------------------
def init_params(key, in_channels, out_channels, hidden_ffn, num_layers,
                num_heads):
    C, H = in_channels, hidden_ffn
    dh = C // num_heads
    scale = 1.0 / float(dh) ** 0.5
    s = 0.1
    bf = lambda a: a.astype(jnp.bfloat16).astype(jnp.float32)
    keys = jax.random.split(key, num_layers + 1)
    Wv = ((max(3 * C, H, C) + 127) // 128) * 128

    raw_layers = []
    wqkv_l, wo_l, w1_l, w2_l, vecs_l = [], [], [], [], []
    for i in range(num_layers):
        ks = jax.random.split(keys[i], 12)
        in_proj_w = bf(jax.random.normal(ks[0], (3 * C, C), jnp.float32) * s)   # torch [3C, C]
        in_proj_b = jax.random.normal(ks[1], (3 * C,), jnp.float32) * s
        out_proj_w = bf(jax.random.normal(ks[2], (C, C), jnp.float32) * s)
        out_proj_b = jax.random.normal(ks[3], (C,), jnp.float32) * s
        conv1_w = bf(jax.random.normal(ks[4], (H, C, 3), jnp.float32) * s)      # torch [H, C, 3]
        conv1_b = jax.random.normal(ks[5], (H,), jnp.float32) * s
        conv2_w = bf(jax.random.normal(ks[6], (C, H, 3), jnp.float32) * s)      # torch [C, H, 3]
        conv2_b = jax.random.normal(ks[7], (C,), jnp.float32) * s
        ln1_g = 1.0 + s * jax.random.normal(ks[8], (C,), jnp.float32)
        ln1_b = s * jax.random.normal(ks[9], (C,), jnp.float32)
        ln2_g = 1.0 + s * jax.random.normal(ks[10], (C,), jnp.float32)
        ln2_b = s * jax.random.normal(ks[11], (C,), jnp.float32)

        raw_layers.append(dict(
            in_proj_w=in_proj_w, in_proj_b=in_proj_b,
            out_proj_w=out_proj_w, out_proj_b=out_proj_b,
            conv1_w=conv1_w, conv1_b=conv1_b,
            conv2_w=conv2_w, conv2_b=conv2_b,
            ln1_g=ln1_g, ln1_b=ln1_b, ln2_g=ln2_g, ln2_b=ln2_b))

        # Packed kernel weights.
        wqkv = in_proj_w.T                                           # [C, 3C]
        wqkv = jnp.concatenate([wqkv[:, :C] * scale, wqkv[:, C:]], axis=1)
        wqkv_l.append(wqkv)
        wo_l.append(out_proj_w.T)                                    # [C, C]
        w1_l.append(jnp.transpose(conv1_w, (2, 1, 0)).reshape(3 * C, H))   # input-side taps
        w2_l.append(jnp.transpose(conv2_w, (1, 2, 0)).reshape(H, 3 * C))   # output-side taps

        bqkv = jnp.concatenate([in_proj_b[:C] * scale, in_proj_b[C:]])
        vec = jnp.zeros((8, Wv), jnp.float32)
        vec = vec.at[0, :3 * C].set(bqkv)
        vec = vec.at[1, :C].set(out_proj_b)
        vec = vec.at[2, :C].set(ln1_g)
        vec = vec.at[3, :C].set(ln1_b)
        vec = vec.at[4, :H].set(conv1_b)
        vec = vec.at[5, :C].set(conv2_b)
        vec = vec.at[6, :C].set(ln2_g)
        vec = vec.at[7, :C].set(ln2_b)
        vecs_l.append(vec)

    kp = jax.random.split(keys[-1], 2)
    postnet_w = bf(jax.random.normal(kp[0], (out_channels, C, 1), jnp.float32) * s)
    postnet_b = jax.random.normal(kp[1], (out_channels,), jnp.float32) * s
    Coutp = ((out_channels + 127) // 128) * 128          # lane-dense output width
    wp = jnp.zeros((C, Coutp), jnp.float32).at[:, :out_channels].set(postnet_w[:, :, 0].T)
    bp = jnp.zeros((1, Coutp), jnp.float32).at[0, :out_channels].set(postnet_b)

    params = dict(
        wqkv=jnp.stack(wqkv_l).astype(jnp.bfloat16),
        wo=jnp.stack(wo_l).astype(jnp.bfloat16),
        w1=jnp.stack(w1_l).astype(jnp.bfloat16),
        w2=jnp.stack(w2_l).astype(jnp.bfloat16),
        vecs=jnp.stack(vecs_l),
        wp=wp.astype(jnp.bfloat16),
        bp=bp,
        out_channels=out_channels,
    )
    raw = dict(layers=raw_layers, postnet_w=postnet_w, postnet_b=postnet_b)
    return params, raw


# --------------------------------------------------------------------------
# Pure-JAX reference implementing the torch-semantics math directly from the
# raw torch-shaped parameters (independent of the kernel's weight packing).
# --------------------------------------------------------------------------
def _ln(x, g, b, eps=1e-5):
    mu = x.mean(-1, keepdims=True)
    var = ((x - mu) ** 2).mean(-1, keepdims=True)
    return (x - mu) * jax.lax.rsqrt(var + eps) * g + b


def _conv1d_k3(x, w, b):
    """x: [B, T, Cin]; w: torch Conv1d weight [Cout, Cin, 3], padding=1."""
    T = x.shape[1]
    xp = jnp.pad(x, ((0, 0), (1, 1), (0, 0)))
    return (xp[:, :T] @ w[:, :, 0].T + xp[:, 1:T + 1] @ w[:, :, 1].T
            + xp[:, 2:T + 2] @ w[:, :, 2].T) + b


def _ref_mha(x, p, num_heads):
    B, T, C = x.shape
    dh = C // num_heads
    qkv = x @ p["in_proj_w"].T + p["in_proj_b"]
    q, k, v = qkv[..., :C], qkv[..., C:2 * C], qkv[..., 2 * C:]
    q = q / float(dh) ** 0.5
    heads = []
    for h in range(num_heads):
        lo, hi = h * dh, (h + 1) * dh
        sc = jnp.einsum("btd,bsd->bts", q[..., lo:hi], k[..., lo:hi])
        w = jax.nn.softmax(sc, axis=-1)
        heads.append(jnp.einsum("bts,bsd->btd", w, v[..., lo:hi]))
    return jnp.concatenate(heads, -1) @ p["out_proj_w"].T + p["out_proj_b"]


def _ref_layer(x, p, num_heads):
    attn = _ref_mha(x, p, num_heads)
    y = _ln(x + attn, p["ln1_g"], p["ln1_b"])
    h = jnp.maximum(_conv1d_k3(y, p["conv1_w"], p["conv1_b"]), 0.0)
    ffn = _conv1d_k3(h, p["conv2_w"], p["conv2_b"])
    return _ln(y + ffn, p["ln2_g"], p["ln2_b"])


def reference_decoder(x_bct, raw, num_heads):
    h = jnp.transpose(x_bct, (0, 2, 1)).astype(jnp.float32)
    for p in raw["layers"]:
        h = _ref_layer(h, p, num_heads)
    o = h @ raw["postnet_w"][:, :, 0].T + raw["postnet_b"]
    return jnp.transpose(o, (0, 2, 1))


# --------------------------------------------------------------------------
if __name__ == "__main__":
    # Small synthetic config (module defaults are C_ffn=1024, 2 heads, 6 layers).
    B, C_IN, C_OUT, T = 2, 32, 16, 16
    HIDDEN_FFN, NUM_HEADS, NUM_LAYERS = 64, 2, 2

    key = jax.random.PRNGKey(0)
    kx, kp = jax.random.split(key)
    x = jax.random.normal(kx, (B, C_IN, T), jnp.float32)      # [B, C, T] like PyTorch
    params, raw = init_params(kp, C_IN, C_OUT, HIDDEN_FFN, NUM_LAYERS, NUM_HEADS)

    out = fftransformer_decoder(x, params, NUM_HEADS)
    out = jax.block_until_ready(out)
    assert out.shape == (B, C_OUT, T), out.shape

    ref = reference_decoder(x, raw, NUM_HEADS)
    # bf16 matmul operands + approx-reciprocal softmax -> loosened tolerance.
    np.testing.assert_allclose(np.asarray(out), np.asarray(ref), rtol=2e-2, atol=2e-2)

    print("KERNEL_OK")
</pallas_src>

<mosaic_0001>
module attributes {stable_mosaic.version = 11 : i64} {
  func.func @decoder_kernel(%arg0: i32, %arg1: i32, %arg2: memref<2x16x32xf32, #tpu.memory_space<vmem>>, %arg3: memref<1x32x96xbf16, #tpu.memory_space<vmem>>, %arg4: memref<1x32x32xbf16, #tpu.memory_space<vmem>>, %arg5: memref<1x96x64xbf16, #tpu.memory_space<vmem>>, %arg6: memref<1x64x96xbf16, #tpu.memory_space<vmem>>, %arg7: memref<1x8x128xf32, #tpu.memory_space<vmem>>, %arg8: memref<32x128xbf16, #tpu.memory_space<vmem>>, %arg9: memref<1x128xf32, #tpu.memory_space<vmem>>, %arg10: memref<2x16x128xf32, #tpu.memory_space<vmem>>, %arg11: memref<32x32xf32, #tpu.memory_space<vmem>>) attributes {dimension_semantics = [#tpu.dimension_semantics<parallel>, #tpu.dimension_semantics<arbitrary>], iteration_bounds = array<i64: 1, 2>, scalar_prefetch = 0 : i64, scratch_operands = 1 : i64, tpu.core_type = #tpu.core_type<tc>, window_params = [{transform_indices = @transform_0, window_bounds = array<i64: 2, 16, 32>}, {transform_indices = @transform_1, window_bounds = array<i64: 1, 32, 96>}, {transform_indices = @transform_2, window_bounds = array<i64: 1, 32, 32>}, {transform_indices = @transform_3, window_bounds = array<i64: 1, 96, 64>}, {transform_indices = @transform_4, window_bounds = array<i64: 1, 64, 96>}, {transform_indices = @transform_5, window_bounds = array<i64: 1, 8, 128>}, {pipeline_mode = #tpu.pipeline_mode<synchronous>, transform_indices = @transform_6, window_bounds = array<i64: 32, 128>}, {pipeline_mode = #tpu.pipeline_mode<synchronous>, transform_indices = @transform_7, window_bounds = array<i64: 1, 128>}, {transform_indices = @transform_8, window_bounds = array<i64: 2, 16, 128>}]} {
    %c0_i32 = arith.constant 0 : i32
    %0 = arith.cmpi eq, %arg1, %c0_i32 : i32
    %1 = arith.extui %0 : i1 to i32
    %c0_i32_0 = arith.constant 0 : i32
    %2 = arith.cmpi ne, %1, %c0_i32_0 : i32
    scf.if %2 {
      %c0_59 = arith.constant 0 : index
      %c0_60 = arith.constant 0 : index
      %c0_61 = arith.constant 0 : index
      %209 = vector.load %arg2[%c0_59, %c0_60, %c0_61] : memref<2x16x32xf32, #tpu.memory_space<vmem>>, vector<2x16x32xf32>
      %210 = vector.shape_cast %209 : vector<2x16x32xf32> to vector<32x32xf32>
      %c0_62 = arith.constant 0 : index
      %c0_63 = arith.constant 0 : index
      %211 = vector.load %arg11[%c0_62, %c0_63] : memref<32x32xf32, #tpu.memory_space<vmem>>, vector<32x32xf32>
      tpu.vector_store %arg11[%c0_62, %c0_63], %210 {strides = array<i32>} : memref<32x32xf32, #tpu.memory_space<vmem>>, vector<32x32xf32>,
    } else {
    }
    %c0 = arith.constant 0 : index
    %c0_1 = arith.constant 0 : index
    %3 = vector.load %arg11[%c0, %c0_1] : memref<32x32xf32, #tpu.memory_space<vmem>>, vector<32x32xf32>
    %c0_2 = arith.constant 0 : index
    %c0_3 = arith.constant 0 : index
    %c0_4 = arith.constant 0 : index
    %4 = vector.load %arg7[%c0_2, %c0_3, %c0_4] : memref<1x8x128xf32, #tpu.memory_space<vmem>>, vector<1x8x128xf32>
    %5 = vector.shape_cast %4 : vector<1x8x128xf32> to vector<8x128xf32>
    %6 = vector.extract_strided_slice %5 {offsets = [0, 0], sizes = [1, 96], strides = [1, 1]} : vector<8x128xf32> to vector<1x96xf32>
    %7 = vector.extract_strided_slice %5 {offsets = [1, 0], sizes = [1, 32], strides = [1, 1]} : vector<8x128xf32> to vector<1x32xf32>
    %8 = vector.extract_strided_slice %5 {offsets = [2, 0], sizes = [1, 32], strides = [1, 1]} : vector<8x128xf32> to vector<1x32xf32>
    %9 = vector.extract_strided_slice %5 {offsets = [3, 0], sizes = [1, 32], strides = [1, 1]} : vector<8x128xf32> to vector<1x32xf32>
    %10 = vector.extract_strided_slice %5 {offsets = [4, 0], sizes = [1, 64], strides = [1, 1]} : vector<8x128xf32> to vector<1x64xf32>
    %11 = vector.extract_strided_slice %5 {offsets = [5, 0], sizes = [1, 32], strides = [1, 1]} : vector<8x128xf32> to vector<1x32xf32>
    %12 = vector.extract_strided_slice %5 {offsets = [6, 0], sizes = [1, 32], strides = [1, 1]} : vector<8x128xf32> to vector<1x32xf32>
    %13 = vector.extract_strided_slice %5 {offsets = [7, 0], sizes = [1, 32], strides = [1, 1]} : vector<8x128xf32> to vector<1x32xf32>
    %14 = tpu.iota {dimensions = array<i32: 0>} : vector<32x1xi32>
    %c0_i32_5 = arith.constant 0 : i32
    %15 = vector.broadcast %c0_i32_5 : i32 to vector<32x1xi32>
    %16 = arith.cmpi eq, %14, %15 : vector<32x1xi32>
    %c16_i32 = arith.constant 16 : i32
    %17 = vector.broadcast %c16_i32 : i32 to vector<32x1xi32>
    %18 = arith.cmpi eq, %14, %17 : vector<32x1xi32>
    %19 = arith.ori %16, %18 : vector<32x1xi1>
    %c15_i32 = arith.constant 15 : i32
    %20 = vector.broadcast %c15_i32 : i32 to vector<32x1xi32>
    %21 = arith.cmpi eq, %14, %20 : vector<32x1xi32>
    %c31_i32 = arith.constant 31 : i32
    %22 = vector.broadcast %c31_i32 : i32 to vector<32x1xi32>
    %23 = arith.cmpi eq, %14, %22 : vector<32x1xi32>
    %24 = arith.ori %21, %23 : vector<32x1xi1>
    %25 = arith.truncf %3 : vector<32x32xf32> to vector<32x32xbf16>
    %c0_6 = arith.constant 0 : index
    %c0_7 = arith.constant 0 : index
    %c0_8 = arith.constant 0 : index
    %26 = vector.load %arg3[%c0_6, %c0_7, %c0_8] : memref<1x32x96xbf16, #tpu.memory_space<vmem>>, vector<1x32x96xbf16>
    %27 = vector.shape_cast %26 : vector<1x32x96xbf16> to vector<32x96xbf16>
    %cst = arith.constant dense<0.000000e+00> : vector<32x96xf32>
    %28 = tpu.matmul %25, %27, %cst {dimension_numbers = #tpu.dot_dimension_numbers<[1], [0], [0], [1], [0, 0, 1, 1], [], []>} : vector<32x32xbf16>, vector<32x96xbf16>, vector<32x96xf32> -> vector<32x96xf32>
    %29 = vector.broadcast %6 : vector<1x96xf32> to vector<32x96xf32>
    %30 = arith.addf %28, %29 : vector<32x96xf32>
    %31 = vector.extract_strided_slice %30 {offsets = [0, 0], sizes = [32, 32], strides = [1, 1]} : vector<32x96xf32> to vector<32x32xf32>
    %32 = vector.extract_strided_slice %30 {offsets = [0, 32], sizes = [32, 32], strides = [1, 1]} : vector<32x96xf32> to vector<32x32xf32>
    %33 = vector.extract_strided_slice %30 {offsets = [0, 64], sizes = [32, 32], strides = [1, 1]} : vector<32x96xf32> to vector<32x32xf32>
    %34 = vector.extract_strided_slice %31 {offsets = [0, 0], sizes = [16, 16], strides = [1, 1]} : vector<32x32xf32> to vector<16x16xf32>
    %35 = arith.truncf %34 : vector<16x16xf32> to vector<16x16xbf16>
    %36 = vector.extract_strided_slice %32 {offsets = [0, 0], sizes = [16, 16], strides = [1, 1]} : vector<32x32xf32> to vector<16x16xf32>
    %37 = arith.truncf %36 : vector<16x16xf32> to vector<16x16xbf16>
    %38 = vector.extract_strided_slice %33 {offsets = [0, 0], sizes = [16, 16], strides = [1, 1]} : vector<32x32xf32> to vector<16x16xf32>
    %39 = arith.truncf %38 : vector<16x16xf32> to vector<16x16xbf16>
    %cst_9 = arith.constant dense<0.000000e+00> : vector<16x16xf32>
    %40 = tpu.matmul %35, %37, %cst_9 {dimension_numbers = #tpu.dot_dimension_numbers<[1], [1], [0], [0], [0, 0, 1, 0], [], []>} : vector<16x16xbf16>, vector<16x16xbf16>, vector<16x16xf32> -> vector<16x16xf32>
    %cst_10 = arith.constant dense<0xFF800000> : vector<16xf32>
    %41 = vector.multi_reduction <maximumf>, %40, %cst_10 [1] : vector<16x16xf32> to vector<16xf32>
    %42 = vector.shape_cast %41 : vector<16xf32> to vector<16x1xf32>
    %43 = vector.broadcast %42 : vector<16x1xf32> to vector<16x16xf32>
    %44 = arith.subf %40, %43 : vector<16x16xf32>
    %45 = math.exp %44 : vector<16x16xf32>
    %cst_11 = arith.constant dense<0.000000e+00> : vector<16xf32>
    %46 = vector.multi_reduction <add>, %45, %cst_11 [1] : vector<16x16xf32> to vector<16xf32>
    %47 = vector.shape_cast %46 : vector<16xf32> to vector<16x1xf32>
    %48 = tpu.reciprocal %47 {approx = true} : vector<16x1xf32> -> vector<16x1xf32>
    %49 = vector.broadcast %48 : vector<16x1xf32> to vector<16x16xf32>
    %50 = arith.mulf %45, %49 : vector<16x16xf32>
    %51 = arith.truncf %50 : vector<16x16xf32> to vector<16x16xbf16>
    %cst_12 = arith.constant dense<0.000000e+00> : vector<16x16xf32>
    %52 = tpu.matmul %51, %39, %cst_12 {dimension_numbers = #tpu.dot_dimension_numbers<[1], [0], [0], [1], [0, 0, 1, 1], [], []>} : vector<16x16xbf16>, vector<16x16xbf16>, vector<16x16xf32> -> vector<16x16xf32>
    %53 = vector.extract_strided_slice %31 {offsets = [0, 16], sizes = [16, 16], strides = [1, 1]} : vector<32x32xf32> to vector<16x16xf32>
    %54 = arith.truncf %53 : vector<16x16xf32> to vector<16x16xbf16>
    %55 = vector.extract_strided_slice %32 {offsets = [0, 16], sizes = [16, 16], strides = [1, 1]} : vector<32x32xf32> to vector<16x16xf32>
    %56 = arith.truncf %55 : vector<16x16xf32> to vector<16x16xbf16>
    %57 = vector.extract_strided_slice %33 {offsets = [0, 16], sizes = [16, 16], strides = [1, 1]} : vector<32x32xf32> to vector<16x16xf32>
    %58 = arith.truncf %57 : vector<16x16xf32> to vector<16x16xbf16>
    %cst_13 = arith.constant dense<0.000000e+00> : vector<16x16xf32>
    %59 = tpu.matmul %54, %56, %cst_13 {dimension_numbers = #tpu.dot_dimension_numbers<[1], [1], [0], [0], [0, 0, 1, 0], [], []>} : vector<16x16xbf16>, vector<16x16xbf16>, vector<16x16xf32> -> vector<16x16xf32>
    %cst_14 = arith.constant dense<0xFF800000> : vector<16xf32>
    %60 = vector.multi_reduction <maximumf>, %59, %cst_14 [1] : vector<16x16xf32> to vector<16xf32>
    %61 = vector.shape_cast %60 : vector<16xf32> to vector<16x1xf32>
    %62 = vector.broadcast %61 : vector<16x1xf32> to vector<16x16xf32>
    %63 = arith.subf %59, %62 : vector<16x16xf32>
    %64 = math.exp %63 : vector<16x16xf32>
    %cst_15 = arith.constant dense<0.000000e+00> : vector<16xf32>
    %65 = vector.multi_reduction <add>, %64, %cst_15 [1] : vector<16x16xf32> to vector<16xf32>
    %66 = vector.shape_cast %65 : vector<16xf32> to vector<16x1xf32>
    %67 = tpu.reciprocal %66 {approx = true} : vector<16x1xf32> -> vector<16x1xf32>
    %68 = vector.broadcast %67 : vector<16x1xf32> to vector<16x16xf32>
    %69 = arith.mulf %64, %68 : vector<16x16xf32>
    %70 = arith.truncf %69 : vector<16x16xf32> to vector<16x16xbf16>
    %cst_16 = arith.constant dense<0.000000e+00> : vector<16x16xf32>
    %71 = tpu.matmul %70, %58, %cst_16 {dimension_numbers = #tpu.dot_dimension_numbers<[1], [0], [0], [1], [0, 0, 1, 1], [], []>} : vector<16x16xbf16>, vector<16x16xbf16>, vector<16x16xf32> -> vector<16x16xf32>
    %72 = tpu.concatenate %52, %71 in 1 : vector<16x16xf32>, vector<16x16xf32> -> vector<16x32xf32>
    %73 = vector.extract_strided_slice %31 {offsets = [16, 0], sizes = [16, 16], strides = [1, 1]} : vector<32x32xf32> to vector<16x16xf32>
    %74 = arith.truncf %73 : vector<16x16xf32> to vector<16x16xbf16>
    %75 = vector.extract_strided_slice %32 {offsets = [16, 0], sizes = [16, 16], strides = [1, 1]} : vector<32x32xf32> to vector<16x16xf32>
    %76 = arith.truncf %75 : vector<16x16xf32> to vector<16x16xbf16>
    %77 = vector.extract_strided_slice %33 {offsets = [16, 0], sizes = [16, 16], strides = [1, 1]} : vector<32x32xf32> to vector<16x16xf32>
    %78 = arith.truncf %77 : vector<16x16xf32> to vector<16x16xbf16>
    %cst_17 = arith.constant dense<0.000000e+00> : vector<16x16xf32>
    %79 = tpu.matmul %74, %76, %cst_17 {dimension_numbers = #tpu.dot_dimension_numbers<[1], [1], [0], [0], [0, 0, 1, 0], [], []>} : vector<16x16xbf16>, vector<16x16xbf16>, vector<16x16xf32> -> vector<16x16xf32>
    %cst_18 = arith.constant dense<0xFF800000> : vector<16xf32>
    %80 = vector.multi_reduction <maximumf>, %79, %cst_18 [1] : vector<16x16xf32> to vector<16xf32>
    %81 = vector.shape_cast %80 : vector<16xf32> to vector<16x1xf32>
    %82 = vector.broadcast %81 : vector<16x1xf32> to vector<16x16xf32>
    %83 = arith.subf %79, %82 : vector<16x16xf32>
    %84 = math.exp %83 : vector<16x16xf32>
    %cst_19 = arith.constant dense<0.000000e+00> : vector<16xf32>
    %85 = vector.multi_reduction <add>, %84, %cst_19 [1] : vector<16x16xf32> to vector<16xf32>
    %86 = vector.shape_cast %85 : vector<16xf32> to vector<16x1xf32>
    %87 = tpu.reciprocal %86 {approx = true} : vector<16x1xf32> -> vector<16x1xf32>
    %88 = vector.broadcast %87 : vector<16x1xf32> to vector<16x16xf32>
    %89 = arith.mulf %84, %88 : vector<16x16xf32>
    %90 = arith.truncf %89 : vector<16x16xf32> to vector<16x16xbf16>
    %cst_20 = arith.constant dense<0.000000e+00> : vector<16x16xf32>
    %91 = tpu.matmul %90, %78, %cst_20 {dimension_numbers = #tpu.dot_dimension_numbers<[1], [0], [0], [1], [0, 0, 1, 1], [], []>} : vector<16x16xbf16>, vector<16x16xbf16>, vector<16x16xf32> -> vector<16x16xf32>
    %92 = vector.extract_strided_slice %31 {offsets = [16, 16], sizes = [16, 16], strides = [1, 1]} : vector<32x32xf32> to vector<16x16xf32>
    %93 = arith.truncf %92 : vector<16x16xf32> to vector<16x16xbf16>
    %94 = vector.extract_strided_slice %32 {offsets = [16, 16], sizes = [16, 16], strides = [1, 1]} : vector<32x32xf32> to vector<16x16xf32>
    %95 = arith.truncf %94 : vector<16x16xf32> to vector<16x16xbf16>
    %96 = vector.extract_strided_slice %33 {offsets = [16, 16], sizes = [16, 16], strides = [1, 1]} : vector<32x32xf32> to vector<16x16xf32>
    %97 = arith.truncf %96 : vector<16x16xf32> to vector<16x16xbf16>
    %cst_21 = arith.constant dense<0.000000e+00> : vector<16x16xf32>
    %98 = tpu.matmul %93, %95, %cst_21 {dimension_numbers = #tpu.dot_dimension_numbers<[1], [1], [0], [0], [0, 0, 1, 0], [], []>} : vector<16x16xbf16>, vector<16x16xbf16>, vector<16x16xf32> -> vector<16x16xf32>
    %cst_22 = arith.constant dense<0xFF800000> : vector<16xf32>
    %99 = vector.multi_reduction <maximumf>, %98, %cst_22 [1] : vector<16x16xf32> to vector<16xf32>
    %100 = vector.shape_cast %99 : vector<16xf32> to vector<16x1xf32>
    %101 = vector.broadcast %100 : vector<16x1xf32> to vector<16x16xf32>
    %102 = arith.subf %98, %101 : vector<16x16xf32>
    %103 = math.exp %102 : vector<16x16xf32>
    %cst_23 = arith.constant dense<0.000000e+00> : vector<16xf32>
    %104 = vector.multi_reduction <add>, %103, %cst_23 [1] : vector<16x16xf32> to vector<16xf32>
    %105 = vector.shape_cast %104 : vector<16xf32> to vector<16x1xf32>
    %106 = tpu.reciprocal %105 {approx = true} : vector<16x1xf32> -> vector<16x1xf32>
    %107 = vector.broadcast %106 : vector<16x1xf32> to vector<16x16xf32>
    %108 = arith.mulf %103, %107 : vector<16x16xf32>
    %109 = arith.truncf %108 : vector<16x16xf32> to vector<16x16xbf16>
    %cst_24 = arith.constant dense<0.000000e+00> : vector<16x16xf32>
    %110 = tpu.matmul %109, %97, %cst_24 {dimension_numbers = #tpu.dot_dimension_numbers<[1], [0], [0], [1], [0, 0, 1, 1], [], []>} : vector<16x16xbf16>, vector<16x16xbf16>, vector<16x16xf32> -> vector<16x16xf32>
    %111 = tpu.concatenate %91, %110 in 1 : vector<16x16xf32>, vector<16x16xf32> -> vector<16x32xf32>
    %112 = tpu.concatenate %72, %111 in 0 : vector<16x32xf32>, vector<16x32xf32> -> vector<32x32xf32>
    %113 = arith.truncf %112 : vector<32x32xf32> to vector<32x32xbf16>
    %c0_25 = arith.constant 0 : index
    %c0_26 = arith.constant 0 : index
    %c0_27 = arith.constant 0 : index
    %114 = vector.load %arg4[%c0_25, %c0_26, %c0_27] : memref<1x32x32xbf16, #tpu.memory_space<vmem>>, vector<1x32x32xbf16>
    %115 = vector.shape_cast %114 : vector<1x32x32xbf16> to vector<32x32xbf16>
    %cst_28 = arith.constant dense<0.000000e+00> : vector<32x32xf32>
    %116 = tpu.matmul %113, %115, %cst_28 {dimension_numbers = #tpu.dot_dimension_numbers<[1], [0], [0], [1], [0, 0, 1, 1], [], []>} : vector<32x32xbf16>, vector<32x32xbf16>, vector<32x32xf32> -> vector<32x32xf32>
    %117 = vector.broadcast %7 : vector<1x32xf32> to vector<32x32xf32>
    %118 = arith.addf %116, %117 : vector<32x32xf32>
    %119 = arith.addf %3, %118 : vector<32x32xf32>
    %cst_29 = arith.constant dense<0.000000e+00> : vector<32xf32>
    %120 = vector.multi_reduction <add>, %119, %cst_29 [1] : vector<32x32xf32> to vector<32xf32>
    %121 = vector.shape_cast %120 : vector<32xf32> to vector<32x1xf32>
    %cst_30 = arith.constant 3.200000e+01 : f32
    %122 = vector.broadcast %cst_30 : f32 to vector<32x1xf32>
    %123 = arith.divf %121, %122 : vector<32x1xf32>
    %124 = vector.broadcast %123 : vector<32x1xf32> to vector<32x32xf32>
    %125 = arith.subf %119, %124 : vector<32x32xf32>
    %126 = arith.mulf %125, %125 : vector<32x32xf32>
    %cst_31 = arith.constant dense<0.000000e+00> : vector<32xf32>
    %127 = vector.multi_reduction <add>, %126, %cst_31 [1] : vector<32x32xf32> to vector<32xf32>
    %128 = vector.shape_cast %127 : vector<32xf32> to vector<32x1xf32>
    %cst_32 = arith.constant 3.200000e+01 : f32
    %129 = vector.broadcast %cst_32 : f32 to vector<32x1xf32>
    %130 = arith.divf %128, %129 : vector<32x1xf32>
    %131 = vector.broadcast %123 : vector<32x1xf32> to vector<32x32xf32>
    %132 = arith.subf %119, %131 : vector<32x32xf32>
    %cst_33 = arith.constant 9.99999974E-6 : f32
    %133 = vector.broadcast %cst_33 : f32 to vector<32x1xf32>
    %134 = arith.addf %130, %133 : vector<32x1xf32>
    %135 = math.rsqrt %134 : vector<32x1xf32>
    %136 = vector.broadcast %135 : vector<32x1xf32> to vector<32x32xf32>
    %137 = arith.mulf %132, %136 : vector<32x32xf32>
    %138 = vector.broadcast %8 : vector<1x32xf32> to vector<32x32xf32>
    %139 = arith.mulf %137, %138 : vector<32x32xf32>
    %140 = vector.broadcast %9 : vector<1x32xf32> to vector<32x32xf32>
    %141 = arith.addf %139, %140 : vector<32x32xf32>
    %c1_i32 = arith.constant 1 : i32
    %142 = tpu.dynamic_rotate %141 by %c1_i32 dim 0 : vector<32x32xf32>, i32 -> vector<32x32xf32>
    %cst_34 = arith.constant 0.000000e+00 : f32
    %143 = vector.shape_cast %19 : vector<32x1xi1> to vector<32x1xi1>
    %144 = vector.broadcast %143 : vector<32x1xi1> to vector<32x32xi1>
    %145 = vector.broadcast %cst_34 : f32 to vector<32x32xf32>
    %146 = arith.select %144, %145, %142 : vector<32x32xi1>, vector<32x32xf32>
    %c31_i32_35 = arith.constant 31 : i32
    %147 = tpu.dynamic_rotate %141 by %c31_i32_35 dim 0 : vector<32x32xf32>, i32 -> vector<32x32xf32>
    %cst_36 = arith.constant 0.000000e+00 : f32
    %148 = vector.shape_cast %24 : vector<32x1xi1> to vector<32x1xi1>
    %149 = vector.broadcast %148 : vector<32x1xi1> to vector<32x32xi1>
    %150 = vector.broadcast %cst_36 : f32 to vector<32x32xf32>
    %151 = arith.select %149, %150, %147 : vector<32x32xi1>, vector<32x32xf32>
    %152 = tpu.concatenate %146, %141, %151 in 1 : vector<32x32xf32>, vector<32x32xf32>, vector<32x32xf32> -> vector<32x96xf32>
    %153 = arith.truncf %152 : vector<32x96xf32> to vector<32x96xbf16>
    %c0_37 = arith.constant 0 : index
    %c0_38 = arith.constant 0 : index
    %c0_39 = arith.constant 0 : index
    %154 = vector.load %arg5[%c0_37, %c0_38, %c0_39] : memref<1x96x64xbf16, #tpu.memory_space<vmem>>, vector<1x96x64xbf16>
    %155 = vector.shape_cast %154 : vector<1x96x64xbf16> to vector<96x64xbf16>
    %cst_40 = arith.constant dense<0.000000e+00> : vector<32x64xf32>
    %156 = tpu.matmul %153, %155, %cst_40 {dimension_numbers = #tpu.dot_dimension_numbers<[1], [0], [0], [1], [0, 0, 1, 1], [], []>} : vector<32x96xbf16>, vector<96x64xbf16>, vector<32x64xf32> -> vector<32x64xf32>
    %157 = vector.broadcast %10 : vector<1x64xf32> to vector<32x64xf32>
    %158 = arith.addf %156, %157 : vector<32x64xf32>
    %cst_41 = arith.constant 0.000000e+00 : f32
    %159 = vector.broadcast %cst_41 : f32 to vector<32x64xf32>
    %160 = arith.maximumf %158, %159 : vector<32x64xf32>
    %161 = arith.truncf %160 : vector<32x64xf32> to vector<32x64xbf16>
    %c0_42 = arith.constant 0 : index
    %c0_43 = arith.constant 0 : index
    %c0_44 = arith.constant 0 : index
    %162 = vector.load %arg6[%c0_42, %c0_43, %c0_44] : memref<1x64x96xbf16, #tpu.memory_space<vmem>>, vector<1x64x96xbf16>
    %163 = vector.shape_cast %162 : vector<1x64x96xbf16> to vector<64x96xbf16>
    %cst_45 = arith.constant dense<0.000000e+00> : vector<32x96xf32>
    %164 = tpu.matmul %161, %163, %cst_45 {dimension_numbers = #tpu.dot_dimension_numbers<[1], [0], [0], [1], [0, 0, 1, 1], [], []>} : vector<32x64xbf16>, vector<64x96xbf16>, vector<32x96xf32> -> vector<32x96xf32>
    %165 = vector.extract_strided_slice %164 {offsets = [0, 0], sizes = [32, 32], strides = [1, 1]} : vector<32x96xf32> to vector<32x32xf32>
    %c1_i32_46 = arith.constant 1 : i32
    %166 = tpu.dynamic_rotate %165 by %c1_i32_46 dim 0 : vector<32x32xf32>, i32 -> vector<32x32xf32>
    %cst_47 = arith.constant 0.000000e+00 : f32
    %167 = vector.shape_cast %19 : vector<32x1xi1> to vector<32x1xi1>
    %168 = vector.broadcast %167 : vector<32x1xi1> to vector<32x32xi1>
    %169 = vector.broadcast %cst_47 : f32 to vector<32x32xf32>
    %170 = arith.select %168, %169, %166 : vector<32x32xi1>, vector<32x32xf32>
    %171 = vector.extract_strided_slice %164 {offsets = [0, 64], sizes = [32, 32], strides = [1, 1]} : vector<32x96xf32> to vector<32x32xf32>
    %c31_i32_48 = arith.constant 31 : i32
    %172 = tpu.dynamic_rotate %171 by %c31_i32_48 dim 0 : vector<32x32xf32>, i32 -> vector<32x32xf32>
    %cst_49 = arith.constant 0.000000e+00 : f32
    %173 = vector.shape_cast %24 : vector<32x1xi1> to vector<32x1xi1>
    %174 = vector.broadcast %173 : vector<32x1xi1> to vector<32x32xi1>
    %175 = vector.broadcast %cst_49 : f32 to vector<32x32xf32>
    %176 = arith.select %174, %175, %172 : vector<32x32xi1>, vector<32x32xf32>
    %177 = vector.extract_strided_slice %164 {offsets = [0, 32], sizes = [32, 32], strides = [1, 1]} : vector<32x96xf32> to vector<32x32xf32>
    %178 = arith.addf %177, %170 : vector<32x32xf32>
    %179 = arith.addf %178, %176 : vector<32x32xf32>
    %180 = vector.broadcast %11 : vector<1x32xf32> to vector<32x32xf32>
    %181 = arith.addf %179, %180 : vector<32x32xf32>
    %182 = arith.addf %141, %181 : vector<32x32xf32>
    %cst_50 = arith.constant dense<0.000000e+00> : vector<32xf32>
    %183 = vector.multi_reduction <add>, %182, %cst_50 [1] : vector<32x32xf32> to vector<32xf32>
    %184 = vector.shape_cast %183 : vector<32xf32> to vector<32x1xf32>
    %cst_51 = arith.constant 3.200000e+01 : f32
    %185 = vector.broadcast %cst_51 : f32 to vector<32x1xf32>
    %186 = arith.divf %184, %185 : vector<32x1xf32>
    %187 = vector.broadcast %186 : vector<32x1xf32> to vector<32x32xf32>
    %188 = arith.subf %182, %187 : vector<32x32xf32>
    %189 = arith.mulf %188, %188 : vector<32x32xf32>
    %cst_52 = arith.constant dense<0.000000e+00> : vector<32xf32>
    %190 = vector.multi_reduction <add>, %189, %cst_52 [1] : vector<32x32xf32> to vector<32xf32>
    %191 = vector.shape_cast %190 : vector<32xf32> to vector<32x1xf32>
    %cst_53 = arith.constant 3.200000e+01 : f32
    %192 = vector.broadcast %cst_53 : f32 to vector<32x1xf32>
    %193 = arith.divf %191, %192 : vector<32x1xf32>
    %194 = vector.broadcast %186 : vector<32x1xf32> to vector<32x32xf32>
    %195 = arith.subf %182, %194 : vector<32x32xf32>
    %cst_54 = arith.constant 9.99999974E-6 : f32
    %196 = vector.broadcast %cst_54 : f32 to vector<32x1xf32>
    %197 = arith.addf %193, %196 : vector<32x1xf32>
    %198 = math.rsqrt %197 : vector<32x1xf32>
    %199 = vector.broadcast %198 : vector<32x1xf32> to vector<32x32xf32>
    %200 = arith.mulf %195, %199 : vector<32x32xf32>
    %201 = vector.broadcast %12 : vector<1x32xf32> to vector<32x32xf32>
    %202 = arith.mulf %200, %201 : vector<32x32xf32>
    %203 = vector.broadcast %13 : vector<1x32xf32> to vector<32x32xf32>
    %204 = arith.addf %202, %203 : vector<32x32xf32>
    %c0_55 = arith.constant 0 : index
    %c0_56 = arith.constant 0 : index
    %205 = vector.load %arg11[%c0_55, %c0_56] : memref<32x32xf32, #tpu.memory_space<vmem>>, vector<32x32xf32>
    tpu.vector_store %arg11[%c0_55, %c0_56], %204 {strides = array<i32>} : memref<32x32xf32, #tpu.memory_space<vmem>>, vector<32x32xf32>,
    %c1_i32_57 = arith.constant 1 : i32
    %206 = arith.cmpi eq, %arg1, %c1_i32_57 : i32
    %207 = arith.extui %206 : i1 to i32
    %c0_i32_58 = arith.constant 0 : i32
    %208 = arith.cmpi ne, %207, %c0_i32_58 : i32
    scf.if %208 {
      %209 = arith.truncf %204 : vector<32x32xf32> to vector<32x32xbf16>
      %c0_59 = arith.constant 0 : index
      %c0_60 = arith.constant 0 : index
      %210 = vector.load %arg8[%c0_59, %c0_60] : memref<32x128xbf16, #tpu.memory_space<vmem>>, vector<32x128xbf16>
      %cst_61 = arith.constant dense<0.000000e+00> : vector<32x128xf32>
      %211 = tpu.matmul %209, %210, %cst_61 {dimension_numbers = #tpu.dot_dimension_numbers<[1], [0], [0], [1], [0, 0, 1, 1], [], []>} : vector<32x32xbf16>, vector<32x128xbf16>, vector<32x128xf32> -> vector<32x128xf32>
      %c0_62 = arith.constant 0 : index
      %c0_63 = arith.constant 0 : index
      %212 = vector.load %arg9[%c0_62, %c0_63] : memref<1x128xf32, #tpu.memory_space<vmem>>, vector<1x128xf32>
      %213 = vector.broadcast %212 : vector<1x128xf32> to vector<32x128xf32>
      %214 = arith.addf %211, %213 : vector<32x128xf32>
      %215 = vector.shape_cast %214 : vector<32x128xf32> to vector<2x16x128xf32>
      %c0_64 = arith.constant 0 : index
      %c0_65 = arith.constant 0 : index
      %c0_66 = arith.constant 0 : index
      %216 = vector.load %arg10[%c0_64, %c0_65, %c0_66] : memref<2x16x128xf32, #tpu.memory_space<vmem>>, vector<2x16x128xf32>
      tpu.vector_store %arg10[%c0_64, %c0_65, %c0_66], %215 {strides = array<i32>} : memref<2x16x128xf32, #tpu.memory_space<vmem>>, vector<2x16x128xf32>,
    } else {
    }
    return
  }
  func.func @transform_0(%arg0: i32, %arg1: i32) -> (i32, i32, i32) {
    %c0_i32 = arith.constant 0 : i32
    %c0_i32_0 = arith.constant 0 : i32
    %c0_i32_1 = arith.constant 0 : i32
    return %arg0, %c0_i32, %c0_i32_0 : i32, i32, i32
  }
  func.func @transform_1(%arg0: i32, %arg1: i32) -> (i32, i32, i32) {
    %c0_i32 = arith.constant 0 : i32
    %c0_i32_0 = arith.constant 0 : i32
    %c0_i32_1 = arith.constant 0 : i32
    return %arg1, %c0_i32, %c0_i32_0 : i32, i32, i32
  }
  func.func @transform_2(%arg0: i32, %arg1: i32) -> (i32, i32, i32) {
    %c0_i32 = arith.constant 0 : i32
    %c0_i32_0 = arith.constant 0 : i32
    %c0_i32_1 = arith.constant 0 : i32
    return %arg1, %c0_i32, %c0_i32_0 : i32, i32, i32
  }
  func.func @transform_3(%arg0: i32, %arg1: i32) -> (i32, i32, i32) {
    %c0_i32 = arith.constant 0 : i32
    %c0_i32_0 = arith.constant 0 : i32
    %c0_i32_1 = arith.constant 0 : i32
    return %arg1, %c0_i32, %c0_i32_0 : i32, i32, i32
  }
  func.func @transform_4(%arg0: i32, %arg1: i32) -> (i32, i32, i32) {
    %c0_i32 = arith.constant 0 : i32
    %c0_i32_0 = arith.constant 0 : i32
    %c0_i32_1 = arith.constant 0 : i32
    return %arg1, %c0_i32, %c0_i32_0 : i32, i32, i32
  }
  func.func @transform_5(%arg0: i32, %arg1: i32) -> (i32, i32, i32) {
    %c0_i32 = arith.constant 0 : i32
    %c0_i32_0 = arith.constant 0 : i32
    %c0_i32_1 = arith.constant 0 : i32
    return %arg1, %c0_i32, %c0_i32_0 : i32, i32, i32
  }
  func.func @transform_6(%arg0: i32, %arg1: i32) -> (i32, i32) {
    %c0_i32 = arith.constant 0 : i32
    %c0_i32_0 = arith.constant 0 : i32
    %c0_i32_1 = arith.constant 0 : i32
    return %c0_i32, %c0_i32_0 : i32, i32
  }
  func.func @transform_7(%arg0: i32, %arg1: i32) -> (i32, i32) {
    %c0_i32 = arith.constant 0 : i32
    %c0_i32_0 = arith.constant 0 : i32
    %c0_i32_1 = arith.constant 0 : i32
    return %c0_i32, %c0_i32_0 : i32, i32
  }
  func.func @transform_8(%arg0: i32, %arg1: i32) -> (i32, i32, i32) {
    %c0_i32 = arith.constant 0 : i32
    %c0_i32_0 = arith.constant 0 : i32
    %c0_i32_1 = arith.constant 0 : i32
    return %arg0, %c0_i32, %c0_i32_0 : i32, i32, i32
  }
}

</mosaic_0001>

<bundles_post_ra>
// kernel: tpu_custom_call.1
= control target key start
LH: loop header
LB: loop body
LE: loop exit
PB: predicated region body
PF: predicated region fallthrough
CT: control target
= control target key end

     0   :  { %13 = vsyncpa [#allocation4], 0  ;;  %s2810_s0 = inlined_call_operand.vmem [shape: f32[2,16,32], index: 0, kind: input, shape index: {}]   ;;  %s2811_s1 = inlined_call_operand.vmem [shape: bf16[2,32,96], index: 1, kind: input, shape index: {}]   ;;  %s2812_s2 = inlined_call_operand.vmem [shape: bf16[2,32,32], index: 2, kind: input, shape index: {}]   ;;  %s2813_s3 = inlined_call_operand.vmem [shape: bf16[2,96,64], index: 3, kind: input, shape index: {}]   ;;  %s2814_s4 = inlined_call_operand.vmem [shape: bf16[2,64,96], index: 4, kind: input, shape index: {}]   ;;  %s2815_s5 = inlined_call_operand.vmem [shape: f32[2,8,128], index: 5, kind: input, shape index: {}]   ;;  %s2816_s6 = inlined_call_operand.hbm [shape: bf16[32,128], index: 6, kind: input, shape index: {}]   ;;  %s2817_s7 = inlined_call_operand.vmem [shape: f32[1,128], index: 7, kind: input, shape index: {}]   ;;  %s2818_s8 = inlined_call_operand.hbm [shape: f32[2,16,128], index: 8, kind: output, shape index: {}]  }
   0x1   :  { %14 = vsyncpa [#allocation5], 0  ;;  %s2402_s27 = smov 0   ;;  %s2404_s28 = smov 0  }
   0x2   :  { %s2406_s29 = smov 0  }
   0x3 LB: > { %s2822_s30 = sadd.s32 4294967295, %s2340_s29   ;;  %s29_s9 = sadd.s32 1, %s2336_s28  ;;  %s2340_s29 = sphi %s2406_s29, %s20_s29   ;;  %s2336_s28 = sphi %s2404_s28, %s2831_s28   ;;  %s2332_s27 = sphi %s2402_s27, %s2830_s27  }
   0x4   : > { %p30_p0 = scmp.ge.s32.totalorder %s29_s9, 2  ;;  %p1905_p1 = scmp.ge.s32.totalorder %s2340_s29, 1 }
   0x5   : > { %p261_p2 = scmp.lt.s32.totalorder %s2340_s29, 3  ;;  %p2429_p4 = scmp.eq.s32.totalorder %s2822_s30, 0 }
   0x6   : > { %s2833_s9 = smov (%p30_p0, %s29_s9), 0  ;;  %s2342_s12 = smov [#allocation3]  }
   0x7   : > { %p2423_p3 = pnand %p1905_p1, %p261_p2  ;;  %s283_s13 = sshll.u32 %s2342_s12, 4  ;;  %s284_s13 = int_to_ptr.vmem [resolvable:$true] %s283_s13 }
   0x8   : > { %s2824_s11 = scalar_select %p2429_p4, 1, 0 }
   0x9   : > { %s2823_s10 = scalar_select %p2423_p3, 1, 0 }
   0xa   : > { %p2114_p5 = pneg %p2423_p3  ;;  %s2256_s17 = scalar_lea.hbm %s2816_s6, 256 }
   0xb   : > { %p2257_p7 = scmp.ne.s32.totalorder %s2816_s6, %s2256_s17  ;;  %p2263_p11 = scmp.lt.u32.totalorder %s2256_s17, %s2816_s6 }
   0xc   : > { %p2437_p6 = pnand %p2429_p4, %p2114_p5 }
   0xe   : > { %p2258_p8 = pneg %p2437_p6 }
  0x10   : > { %p2259_p9 = pnand %p2258_p8, %p2257_p7 }
  0x12   : > { %p2260_p10 = pneg %p2259_p9 }
  0x14   : > { %p2265_p12 = pnand %p2263_p11, %p2260_p10 }
  0x16   : > { %2268 = shalt.err (!%p2265_p12)
}
  0x17   : > { %s2269_s22 = scalar_lea.vmem %s284_s13, 256  ;;  %p2277_p2 = scmp.lt.s32.totalorder %s284_s13, %s284_s13 }
  0x18   : > { %p2270_p13 = scmp.ne.s32.totalorder %s284_s13, %s2269_s22  ;;  %p2278_p5 = scmp.lt.s32.totalorder %s2269_s22, %s2269_s22 }
  0x1a   : > { %p2272_p0 = pnand %p2270_p13, %p2258_p8  ;;  %p2279_p4 = por %p2278_p5, %p2277_p2 }
  0x1c   : > { %p2273_p1 = pneg %p2272_p0 }
  0x1e   : > { %p2280_p3 = pnand %p2279_p4, %p2273_p1 }
  0x20   : > { %2283 = shalt.err (!%p2280_p3)
}
  0x21   : > { %s2343_s23 = smov 64   ;;  %s2344_s24 = smov 4  }
  0x22   : > { %2117 = dma.hbm_to_vmem [thread:$0]  (!%p2437_p6), %s2816_s6, 256, %s284_s13, [#allocation4], %s2343_s23, %s2343_s23, %s2344_s24  }
  0x23   : > { %p2826_p7 = scmp.ne.s32.totalorder %s2823_s10, 0 }
  0x24   : > { %p2827_p9 = scmp.ne.s32.totalorder (!%p2826_p7), %s2824_s11, 0 }
  0x25   : > { %341 = sbr.rel (%p2826_p7) target bundleno = 3337 (0xd09), region = 52 }
  0x2c   : > { %2323 = dma.done.wait (%p2827_p9), [#allocation4], 256  }
  0x2d   : > { %2325 = vsyncadd (%p2827_p9), [#allocation4], 4294967040  ;;  %p402_p3 = scmp.lt.s32.totalorder %s2332_s27, 1  ;;  %p1919_p4 = scmp.ne.s32.totalorder %s2332_s27, 0 }
  0x2e   : > { %v432_v0 = vld [vmem:[%s2810_s0] sm:$0xff] (!%p1919_p4)  ;;  %vm436_vm0 = vcmask (!%p1919_p4), 261120   ;;  %v433_v1 = vld [vmem:[%s2810_s0 + $0x8] sm:$0xff] (!%p1919_p4)  ;;  %v434_v2 = vld [vmem:[%s2810_s0 + $0x10] sm:$0xff] (!%p1919_p4) }
  0x2f   : > { %s403_s12 = scalar_select %p402_p3, %s2332_s27, 1 }
  0x30   : > { %431 = sbr.rel (%p1919_p4) target bundleno = 55 (0x37), region = 60  ;;  %437 = vst.msk [vmem:[#allocation2] sm:$0xff] (!%p1919_p4), %vm436_vm0, %v432_v0  ;;  %438 = vst.msk [vmem:[#allocation2 + $0x8] sm:$0xff] (!%p1919_p4), %vm436_vm0, %v433_v1  ;;  %v435_v3 = vld [vmem:[%s2810_s0 + $0x18] sm:$0xff] (!%p1919_p4) }
  0x31   : > { %s1960_s15 = sshll.u32 %s403_s12, 4  ;;  %s2105_s16 = smul.u32 48, %s403_s12  ;;  %439 = vst.msk [vmem:[#allocation2 + $0x10] sm:$0xff] (!%p1919_p4), %vm436_vm0, %v434_v2  ;;  %440 = vst.msk [vmem:[#allocation2 + $0x18] sm:$0xff] (!%p1919_p4), %vm436_vm0, %v435_v3 }
  0x32   : > { %s406_s18 = scalar_lea.vmem %s2811_s1, %s1960_s15  ;;  %s2471_s10 = scalar_lea.vmem %s2812_s2, %s1960_s15 }
  0x33   : > { %s2476_s11 = scalar_lea.vmem %s2813_s3, %s2105_s16  ;;  %s1962_s22 = sshll.u32 %s403_s12, 5 }
  0x34   : > { %s2481_s25 = scalar_lea.vmem %s2814_s4, %s1962_s22  ;;  %s1918_s26 = sshll.u32 %s403_s12, 3 }
  0x35   : > { %s2486_s17 = scalar_lea.vmem %s2815_s5, %s1918_s26 }
  0x37 PF: > { %v2191_v4 = vld [vmem:[%s406_s18] sm:$0xff]   ;;  %v2192_v5 = vld [vmem:[%s406_s18 + $0x8] sm:$0xff]   ;;  %vm497_vm1 = vcmask 261120   ;;  %v446_v12 = vlaneseq  ;;  %v2345_v15 = vmov 0.0   ;;  %vm2346_vm2 = vmmov 0   ;;  %s2347_s18 = smov 112  }
  0x38   : > { %2005 = vmatprep.subr.bf16.mxu0 %v2191_v4  ;;  %v2501_v6 = vld [vmem:[#allocation2] sm:$0xff]  ;;  %v2503_v7 = vld [vmem:[#allocation2 + $0x8] sm:$0xff]  ;;  %v2507_v9 = vld [vmem:[#allocation2 + $0x10] sm:$0xff]  ;;  %2013 = vmatprep.subr.bf16.mxu1 %v2345_v15  ;;  %s2348_s22 = smov 96   ;;  %s2349_s23 = smov 80   ;;  %vm557_vm3 = vcmask 130048  }
  0x39   : > { %2006 = vmatpush3.bf16.msra.mxu0 %v2191_v4  ;;  %v475_v8 = vpack.c.bf16 %v2503_v7, %v2501_v6  ;;  %v2509_v10 = vld [vmem:[#allocation2 + $0x18] sm:$0xff]  ;;  %v2515_v13 = vshrl.u32 %v446_v12, 7  ;;  %v2521_v16 = vld [vmem:[%s2486_s17] sm:$0xff]  ;;  %2015 = vmatprep.mubr.msk.bf16.mxu1 %vm2346_vm2, %v2345_v15  ;;  %s2350_s24 = smov 64   ;;  %s2351_s26 = smov 48   ;;  %vm1286_vm10 = vcmask 523264  }
  0x3a   : > { %2007 = vmatprep.subr.bf16.mxu0 %v2192_v5  ;;  %v476_v11 = vpack.c.bf16 %v2509_v10, %v2507_v9  ;;  %s2352_s14 = smov 16   ;;  %vm1345_vm11 = vcmask 785408   ;;  %p1950_p6 = scmp.ne.s32.totalorder %s2332_s27, 1 }
  0x3b   : > { %2009 = vmatprep.mubr.msk.bf16.mxu0 %vm497_vm1, %v475_v8  ;;  %v483_v14 = vsub.s32 0, %v2515_v13  ;;  %vm1233_vm4 = vcmp.lt.s32.totalorder %v2515_v13, 7  ;;  %vm451_vm7 = vcmp.eq.s32.totalorder %v2515_v13, 0  ;;  %vm1212_vm8 = vcmp.lt.s32.totalorder %v2515_v13, 1 }
  0x3d   : > { %2008 = vmatpush3.bf16.msra.mxu0 %v2192_v5  ;;  %v484_v17 = vrot.slane %v2521_v16, %v483_v14 }
  0x3e   : > { %2019 = vmatprep.subr.bf16.mxu0 %v2345_v15 }
  0x40   : > { %2010 = vmatmul.mubr.msk.bf16.vlgmr.msra.gmra.mrb[0].mxu0 %vm497_vm1, %v476_v11 }
  0x41   : > { %2021 = vmatprep.mubr.msk.bf16.mxu0 %vm2346_vm2, %v2345_v15 }
 0x113   : > { %v2011_v18 = vpop.f32.mrb[0].mxu0 }
 0x114   : > { %v538_v19 = vpop.f32.mrb[1].mxu0  ;;  %v547_v21 = vadd.f32 %v2011_v18, %v484_v17 }
 0x115   : > { %v2012_v20 = vpop.f32.mrb[2].mxu0  ;;  %v539_v24 = vadd.f32 %v538_v19, %v484_v17 }
 0x116   : > { %v550_v22 = vadd.f32 %v2012_v20, %v484_v17  ;;  %v541_v23 = vpop.f32.mrb[3].mxu0 }
 0x117   : > { %v542_v25 = vadd.f32 %v541_v23, %v484_v17 }
 0x118   : > { %v2528_v26 = vpack.c.bf16 %v550_v22, %v547_v21 }
 0x119   : > { %v2530_v27 = vpack.c.bf16 %v542_v25, %v539_v24 }
 0x11b   : > { %675 = vrot.lane.b32.xlu1 %v2530_v27, %s2347_s18  ;;  %555 = vrot.lane.b32.xlu0 %v2530_v27, %s2348_s22 }
 0x11f   : > { %808 = vrot.lane.b32.xlu1 %v2528_v26, %s2348_s22  ;;  %677 = vrot.lane.b32.xlu0 %v2530_v27, %s2349_s23 }
 0x123   : > { %927 = vrot.lane.b32.xlu1 %v2528_v26, %s2347_s18  ;;  %929 = vrot.lane.b32.xlu0 %v2528_v26, %s2349_s23 }
 0x18d   : > { %v556_v28 = vpop.permute.xlu0 %555  ;;  %v676_v31 = vpop.permute.xlu1 %675 }
 0x18e   : > { %v562_v29 = vsel %vm557_vm3, %v556_v28, 0 }
 0x18f   : > { %2014 = vmatpush3.bf16.xpose.msra.mxu1 %v562_v29 }
 0x190   : > { %2025 = vmatprep.subr.bf16.mxu1 %v2345_v15 }
 0x191   : > { %v678_v30 = vpop.permute.xlu0 %677  ;;  %v809_v33 = vpop.permute.xlu1 %808 }
 0x192   : > { %v683_v32 = vsel %vm557_vm3, %v678_v30, 0  ;;  %v814_v34 = vsel %vm557_vm3, %v809_v33, 0 }
 0x195   : > { %v930_v35 = vpop.permute.xlu0 %929  ;;  %v928_v37 = vpop.permute.xlu1 %927 }
 0x196   : > { %2016 = vmatmul.mubr.msk.bf16.vlgmr.msra.gmra.mrb[0].mxu1 %vm557_vm3, %v2530_v27  ;;  %v935_v36 = vsel %vm557_vm3, %v930_v35, 0 }
 0x197   : > { %2026 = vmatpush3.bf16.xpose.msra.mxu1 %v683_v32  ;;  %2027 = vmatprep.mubr.msk.bf16.mxu1 %vm2346_vm2, %v2345_v15 }
 0x198   : > { %2037 = vmatprep.subr.bf16.mxu1 %v2345_v15 }
 0x19e   : > { %2028 = vmatmul.mubr.msk.bf16.vlgmr.msra.gmra.mrb[4].mxu1 %vm557_vm3, %v676_v31 }
 0x19f   : > { %2038 = vmatpush3.bf16.xpose.msra.mxu1 %v814_v34  ;;  %2039 = vmatprep.mubr.msk.bf16.mxu1 %vm2346_vm2, %v2345_v15 }
 0x1a0   : > { %2049 = vmatprep.subr.bf16.mxu1 %v2345_v15 }
 0x1a6   : > { %2040 = vmatmul.mubr.msk.bf16.vlgmr.msra.gmra.mrb[8].mxu1 %vm557_vm3, %v2528_v26 }
 0x1a7   : > { %2050 = vmatpush3.bf16.xpose.msra.mxu1 %v935_v36  ;;  %2051 = vmatprep.mubr.msk.bf16.mxu1 %vm2346_vm2, %v2345_v15 }
 0x1ae   : > { %2052 = vmatmul.mubr.msk.bf16.vlgmr.msra.gmra.mrb[12].mxu1 %vm557_vm3, %v928_v37 }
 0x269   : > { %v598_v38 = vpop.f32.mrb[0].mxu1 }
 0x26a   : > { %v2017_v39 = vpop.f32.mrb[1].mxu1  ;;  %v605_v40 = vsel %vm557_vm3, %v598_v38, -inf }
 0x26b   : > { %606 = vmax.xlane.f32.xlu0 %v605_v40  ;;  %v601_v41 = vpop.f32.mrb[2].mxu1 }
 0x26c   : > { %v2018_v42 = vpop.f32.mrb[3].mxu1  ;;  %v608_v43 = vsel %vm557_vm3, %v601_v41, -inf }
 0x26d   : > { %609 = vmax.xlane.f32.xlu1 %v608_v43 }
 0x271   : > { %v719_v44 = vpop.f32.mrb[4].mxu1 }
 0x272   : > { %v2029_v45 = vpop.f32.mrb[5].mxu1  ;;  %v726_v46 = vsel %vm557_vm3, %v719_v44, -inf }
 0x273   : > { %727 = vmax.xlane.f32.xlu0 %v726_v46  ;;  %v722_v47 = vpop.f32.mrb[6].mxu1 }
 0x274   : > { %v2030_v48 = vpop.f32.mrb[7].mxu1  ;;  %v729_v49 = vsel %vm557_vm3, %v722_v47, -inf }
 0x277   : > { %730 = vmax.xlane.f32.xlu0 %v729_v49 }
 0x279   : > { %v850_v50 = vpop.f32.mrb[8].mxu1 }
 0x27a   : > { %v2041_v51 = vpop.f32.mrb[9].mxu1  ;;  %v857_v52 = vsel %vm557_vm3, %v850_v50, -inf }
 0x27b   : > { %858 = vmax.xlane.f32.xlu1 %v857_v52  ;;  %v853_v53 = vpop.f32.mrb[10].mxu1 }
 0x27c   : > { %v2042_v54 = vpop.f32.mrb[11].mxu1  ;;  %v860_v55 = vsel %vm557_vm3, %v853_v53, -inf }
 0x27d   : > { %861 = vmax.xlane.f32.xlu0 %v860_v55 }
 0x281   : > { %v971_v56 = vpop.f32.mrb[12].mxu1 }
 0x282   : > { %v2053_v57 = vpop.f32.mrb[13].mxu1  ;;  %v978_v58 = vsel %vm557_vm3, %v971_v56, -inf }
 0x283   : > { %979 = vmax.xlane.f32.xlu1 %v978_v58  ;;  %v974_v59 = vpop.f32.mrb[14].mxu1 }
 0x284   : > { %v2054_v60 = vpop.f32.mrb[15].mxu1  ;;  %v981_v61 = vsel %vm557_vm3, %v974_v59, -inf }
 0x285   : > { %982 = vmax.xlane.f32.xlu0 %v981_v61 }
 0x294   : > { %628 = vrot.lane.b32.xlu1 %v2530_v27, %s2350_s24 }
 0x2f8   : > { %v607_v62 = vpop.xlane.xlu0 %606 }
 0x2f9   : > { %v611_v63 = vsub.f32 %v598_v38, %v607_v62 }
 0x2fa   : > { %v610_v0 = vpop.xlane.xlu1 %609 }
 0x2fb   : > { %v613_v1 = vmul.f32 1.442695, %v611_v63  ;;  %v612_v2 = vsub.f32 %v601_v41, %v610_v0 }
 0x2fd   : > { %2205 = vpow2.f32 %v613_v1  ;;  %v615_v3 = vmul.f32 1.442695, %v612_v2 }
 0x2ff   : > { %2207 = vpow2.f32 %v615_v3 }
 0x300   : > { %v728_v4 = vpop.xlane.xlu0 %727 }
 0x301   : > { %v732_v5 = vsub.f32 %v719_v44, %v728_v4 }
 0x303   : > { %v734_v8 = vmul.f32 1.442695, %v732_v5 }
 0x304   : > { %v731_v11 = vpop.xlane.xlu0 %730 }
 0x305   : > { %2209 = vpow2.f32 %v734_v8  ;;  %v733_v12 = vsub.f32 %v722_v47, %v731_v11 }
 0x307   : > { %v2206_v14 = vpop.eup %2205  ;;  %v736_v17 = vmul.f32 1.442695, %v733_v12 }
 0x308   : > { %v859_v18 = vpop.xlane.xlu1 %858  ;;  %v617_v19 = vsel %vm557_vm3, %v2206_v14, 0.0 }
 0x309   : > { %v2208_v20 = vpop.eup %2207  ;;  %2211 = vpow2.f32 %v736_v17  ;;  %v863_v21 = vsub.f32 %v850_v50, %v859_v18  ;;  %618 = vadd.xlane.f32.xlu1 %v617_v19 }
 0x30a   : > { %v862_v22 = vpop.xlane.xlu0 %861  ;;  %v620_v23 = vsel %vm557_vm3, %v2208_v20, 0.0 }
 0x30b   : > { %v865_v24 = vmul.f32 1.442695, %v863_v21  ;;  %v864_v25 = vsub.f32 %v853_v53, %v862_v22  ;;  %621 = vadd.xlane.f32.xlu0 %v620_v23 }
 0x30d   : > { %2213 = vpow2.f32 %v865_v24  ;;  %v867_v28 = vmul.f32 1.442695, %v864_v25  ;;  %v2193_v24 = vld [vmem:[%s2471_s10] sm:$0xff]  }
 0x30e   : > { %2061 = vmatprep.subr.bf16.mxu1 %v2193_v24 }
 0x30f   : > { %v2210_v29 = vpop.eup %2209  ;;  %2215 = vpow2.f32 %v867_v28  ;;  %2062 = vmatpush3.bf16.msra.mxu1 %v2193_v24 }
 0x310   : > { %v980_v30 = vpop.xlane.xlu1 %979  ;;  %v738_v31 = vsel %vm557_vm3, %v2210_v29, 0.0 }
 0x311   : > { %v984_v32 = vsub.f32 %v971_v56, %v980_v30  ;;  %739 = vadd.xlane.f32.xlu1 %v738_v31 }
 0x312   : > { %v983_v33 = vpop.xlane.xlu0 %982 }
 0x313   : > { %v2212_v34 = vpop.eup %2211  ;;  %v986_v35 = vmul.f32 1.442695, %v984_v32  ;;  %v985_v36 = vsub.f32 %v974_v59, %v983_v33  ;;  %v2194_v32 = vld [vmem:[%s2471_s10 + $0x8] sm:$0xff]   ;;  %s2353_s10 = smov 32  }
 0x314   : > { %v629_v37 = vpop.permute.xlu1 %628  ;;  %v741_v38 = vsel %vm557_vm3, %v2212_v34, 0.0  ;;  %2063 = vmatprep.subr.bf16.mxu1 %v2194_v32 }
 0x315   : > { %2217 = vpow2.f32 %v986_v35  ;;  %v988_v39 = vmul.f32 1.442695, %v985_v36  ;;  %2020 = vmatpush3.bf16.msra.mxu0 %v629_v37  ;;  %742 = vadd.xlane.f32.xlu0 %v741_v38 }
 0x316   : > { %2031 = vmatprep.subr.bf16.mxu0 %v2345_v15  ;;  %2064 = vmatpush3.bf16.msra.mxu1 %v2194_v32 }
 0x317   : > { %v2214_v40 = vpop.eup %2213  ;;  %2219 = vpow2.f32 %v988_v39 }
 0x318   : > { %v869_v41 = vsel %vm557_vm3, %v2214_v40, 0.0 }
 0x319   : > { %v2216_v42 = vpop.eup %2215  ;;  %870 = vadd.xlane.f32.xlu1 %v869_v41 }
 0x31a   : > { %v872_v43 = vsel %vm557_vm3, %v2216_v42, 0.0 }
 0x31b   : > { %873 = vadd.xlane.f32.xlu0 %v872_v43 }
 0x31f   : > { %v2218_v44 = vpop.eup %2217 }
 0x320   : > { %v990_v45 = vsel %vm557_vm3, %v2218_v44, 0.0 }
 0x321   : > { %v2220_v46 = vpop.eup %2219  ;;  %991 = vadd.xlane.f32.xlu1 %v990_v45 }
 0x322   : > { %v993_v47 = vsel %vm557_vm3, %v2220_v46, 0.0 }
 0x323   : > { %994 = vadd.xlane.f32.xlu0 %v993_v47 }
 0x332   : > { %880 = vrot.lane.b32.xlu1 %v2528_v26, %s2350_s24 }
 0x336   : > { %1001 = vrot.lane.b32.xlu1 %v2528_v26, %s2351_s26 }
 0x339   : > { %749 = vrot.lane.b32.xlu0 %v2530_v27, %s2351_s26 }
 0x396   : > { %v619_v48 = vpop.xlane.xlu1 %618 }
 0x397   : > { %2221 = vrcp.f32 %v619_v48 }
 0x398   : > { %v622_v49 = vpop.xlane.xlu0 %621 }
 0x399   : > { %2223 = vrcp.f32 %v622_v49 }
 0x39e   : > { %v740_v55 = vpop.xlane.xlu1 %739 }
 0x3a1   : > { %v2222_v50 = vpop.eup %2221 }
 0x3a2   : > { %v743_v51 = vpop.xlane.xlu0 %742  ;;  %v625_v53 = vmul.f32 %v2222_v50, %v2206_v14 }
 0x3a3   : > { %v2224_v52 = vpop.eup %2223  ;;  %2225 = vrcp.f32 %v743_v51 }
 0x3a4   : > { %v626_v54 = vmul.f32 %v2224_v52, %v2208_v20  ;;  %2227 = vrcp.f32 %v740_v55 }
 0x3a6   : > { %v627_v56 = vpack.c.bf16 %v626_v54, %v625_v53  ;;  %v871_v27 = vpop.xlane.xlu1 %870  ;;  %v1066_v53 = vsub.s32 1, %v2515_v13 }
 0x3a8   : > { %2022 = vmatmul.mubr.msk.bf16.vlgmr.msra.gmra.mrb[4].mxu0 %vm557_vm3, %v627_v56  ;;  %v874_v26 = vpop.xlane.xlu0 %873  ;;  %v1067_v54 = vrot.slane %v2521_v16, %v1066_v53  ;;  %v2198_v53 = vld [vmem:[%s2476_s11 + $0x18] sm:$0xff]  }
 0x3a9   : > { %2033 = vmatprep.mubr.msk.bf16.mxu0 %vm2346_vm2, %v2345_v15  ;;  %2229 = vrcp.f32 %v874_v26 }
 0x3aa   : > { %2231 = vrcp.f32 %v871_v27 }
 0x3ad   : > { %v2226_v57 = vpop.eup %2225 }
 0x3ae   : > { %v2228_v59 = vpop.eup %2227  ;;  %v747_v60 = vmul.f32 %v2226_v57, %v2212_v34  ;;  %v992_v61 = vpop.xlane.xlu1 %991 }
 0x3af   : > { %v746_v62 = vmul.f32 %v2228_v59, %v2210_v29 }
 0x3b0   : > { %v995_v58 = vpop.xlane.xlu0 %994 }
 0x3b1   : > { %2233 = vrcp.f32 %v995_v58  ;;  %v748_v0 = vpack.c.bf16 %v747_v60, %v746_v62 }
 0x3b2   : > { %2235 = vrcp.f32 %v992_v61  ;;  %v881_v2 = vpop.permute.xlu1 %880 }
 0x3b3   : > { %v2230_v1 = vpop.eup %2229 }
 0x3b4   : > { %v750_v63 = vpop.permute.xlu0 %749  ;;  %v2232_v3 = vpop.eup %2231  ;;  %v878_v4 = vmul.f32 %v2230_v1, %v2216_v42 }
 0x3b5   : > { %2032 = vmatpush3.bf16.msra.mxu0 %v750_v63  ;;  %v877_v5 = vmul.f32 %v2232_v3, %v2214_v40 }
 0x3b6   : > { %2043 = vmatprep.subr.bf16.mxu0 %v2345_v15  ;;  %v1002_v12 = vpop.permute.xlu1 %1001 }
 0x3b7   : > { %v879_v8 = vpack.c.bf16 %v878_v4, %v877_v5 }
 0x3b8   : > { %2034 = vmatmul.mubr.msk.bf16.vlgmr.msra.gmra.mrb[8].mxu0 %vm557_vm3, %v748_v0 }
 0x3b9   : > { %2044 = vmatpush3.bf16.msra.mxu0 %v881_v2  ;;  %2045 = vmatprep.mubr.msk.bf16.mxu0 %vm2346_vm2, %v2345_v15 }
 0x3ba   : > { %2055 = vmatprep.subr.bf16.mxu0 %v2345_v15 }
 0x3bb   : > { %v2234_v11 = vpop.eup %2233 }
 0x3bc   : > { %v2236_v14 = vpop.eup %2235  ;;  %v999_v17 = vmul.f32 %v2234_v11, %v2220_v46 }
 0x3bd   : > { %v998_v18 = vmul.f32 %v2236_v14, %v2218_v44 }
 0x3bf   : > { %v1000_v19 = vpack.c.bf16 %v999_v17, %v998_v18 }
 0x3c0   : > { %2046 = vmatmul.mubr.msk.bf16.vlgmr.msra.gmra.mrb[12].mxu0 %vm557_vm3, %v879_v8 }
 0x3c1   : > { %2056 = vmatpush3.bf16.msra.mxu0 %v1002_v12  ;;  %2057 = vmatprep.mubr.msk.bf16.mxu0 %vm2346_vm2, %v2345_v15 }
 0x3c8   : > { %2058 = vmatmul.mubr.msk.bf16.vlgmr.msra.gmra.mrb[16].mxu0 %vm557_vm3, %v1000_v19 }
 0x47b   : > { %v668_v20 = vpop.f32.mrb[4].mxu0 }
 0x47c   : > { %v2023_v21 = vpop.f32.mrb[5].mxu0 }
 0x47d   : > { %v671_v22 = vpop.f32.mrb[6].mxu0 }
 0x47e   : > { %v2024_v23 = vpop.f32.mrb[7].mxu0 }
 0x48b   : > { %v789_v25 = vpop.f32.mrb[8].mxu0 }
 0x48c   : > { %v2035_v28 = vpop.f32.mrb[9].mxu0 }
 0x48d   : > { %v792_v29 = vpop.f32.mrb[10].mxu0 }
 0x48e   : > { %v2161_v30 = vpack.i.bf16 %v792_v29, %v789_v25  ;;  %v2036_v31 = vpop.f32.mrb[11].mxu0 }
 0x48f   : > { %v2196_v31 = vld [vmem:[%s2476_s11 + $0x8] sm:$0xff]  }
 0x490   : > { %2162 = vrot.lane.b32.xlu0 %v2161_v30, %s2352_s14  ;;  %v2195_v30 = vld [vmem:[%s2476_s11] sm:$0xff]  }
 0x491   : > { %2069 = vmatprep.subr.bf16.mxu0 %v2195_v30 }
 0x492   : > { %2070 = vmatpush3.bf16.msra.mxu0 %v2195_v30 }
 0x493   : > { %v920_v15 = vpop.f32.mrb[12].mxu0  ;;  %2071 = vmatprep.subr.bf16.mxu0 %v2196_v31 }
 0x494   : > { %v2047_v33 = vpop.f32.mrb[13].mxu0 }
 0x495   : > { %v923_v34 = vpop.f32.mrb[14].mxu0 }
 0x496   : > { %v2048_v35 = vpop.f32.mrb[15].mxu0  ;;  %2072 = vmatpush3.bf16.msra.mxu0 %v2196_v31 }
 0x49b   : > { %v1041_v36 = vpop.f32.mrb[16].mxu0 }
 0x49c   : > { %v2059_v37 = vpop.f32.mrb[17].mxu0 }
 0x49d   : > { %v1044_v38 = vpop.f32.mrb[18].mxu0 }
 0x49e   : > { %v2166_v39 = vpack.i.bf16 %v1044_v38, %v1041_v36  ;;  %v2060_v40 = vpop.f32.mrb[19].mxu0 }
 0x4a0   : > { %2167 = vrot.lane.b32.xlu1 %v2166_v39, %s2352_s14 }
 0x502   : > { %v2163_v41 = vpop.permute.xlu0 %2162 }
 0x503   : > { %v2165_v42 = vunpack.i.h.bf16 %v2163_v41  ;;  %v2164_v43 = vunpack.i.l.bf16 %v2163_v41 }
 0x505   : > { %v805_v44 = vsel %vm557_vm3, %v671_v22, %v2165_v42  ;;  %v804_v45 = vsel %vm557_vm3, %v668_v20, %v2164_v43 }
 0x506   : > { %v1058_v46 = vpack.c.bf16 %v805_v44, %v804_v45  ;;  %v1194_v44 = vsub.s32 2, %v2515_v13 }
 0x508   : > { %2065 = vmatprep.mubr.msk.bf16.mxu1 %vm497_vm1, %v1058_v46 }
 0x512   : > { %v2168_v47 = vpop.permute.xlu1 %2167 }
 0x513   : > { %v2170_v48 = vunpack.i.h.bf16 %v2168_v47  ;;  %v2169_v49 = vunpack.i.l.bf16 %v2168_v47  ;;  %v1195_v47 = vrot.slane %v2521_v16, %v1194_v44 }
 0x515   : > { %v1057_v50 = vsel %vm557_vm3, %v923_v34, %v2170_v48  ;;  %v1056_v51 = vsel %vm557_vm3, %v920_v15, %v2169_v49  ;;  %v2197_v15 = vld [vmem:[%s2476_s11 + $0x10] sm:$0xff]   ;;  %v1202_v48 = vsub.s32 3, %v2515_v13 }
 0x516   : > { %v1059_v52 = vpack.c.bf16 %v1057_v50, %v1056_v51  ;;  %2073 = vmatprep.subr.bf16.mxu0 %v2197_v15 }
 0x517   : > { %2074 = vmatpush3.bf16.msra.mxu0 %v2197_v15  ;;  %v1203_v50 = vrot.slane %v2521_v16, %v1202_v48 }
 0x518   : > { %2066 = vmatmul.mubr.msk.bf16.vlgmr.msra.gmra.mrb[16].mxu1 %vm497_vm1, %v1059_v52  ;;  %2075 = vmatprep.subr.bf16.mxu0 %v2198_v53 }
 0x51b   : > { %2076 = vmatpush3.bf16.msra.mxu0 %v2198_v53 }
 0x5eb   : > { %v2067_v55 = vpop.f32.mrb[16].mxu1 }
 0x5ec   : > { %v1129_v56 = vadd.f32 %v2067_v55, %v1067_v54  ;;  %v1120_v26 = vpop.f32.mrb[17].mxu1 }
 0x5ed   : > { %v1121_v27 = vadd.f32 %v1120_v26, %v1067_v54  ;;  %v2068_v57 = vpop.f32.mrb[18].mxu1 }
 0x5ee   : > { %v1123_v58 = vpop.f32.mrb[19].mxu1  ;;  %v1137_v59 = vadd.f32 %v1129_v56, %v2507_v9  ;;  %v1132_v63 = vadd.f32 %v2068_v57, %v1067_v54 }
 0x5ef   : > { %v1124_v60 = vadd.f32 %v1123_v58, %v1067_v54  ;;  %v1135_v61 = vadd.f32 %v1121_v27, %v2501_v6  ;;  %v2199_v58 = vld [vmem:[%s2476_s11 + $0x20] sm:$0xff]  }
 0x5f0   : > { %v1145_v62 = vsel %vm497_vm1, %v1137_v59, 0.0  ;;  %v1138_v3 = vadd.f32 %v1132_v63, %v2509_v10  ;;  %2077 = vmatprep.subr.bf16.mxu0 %v2199_v58 }
 0x5f1   : > { %1146 = vadd.xlane.f32.xlu1 %v1145_v62  ;;  %v1139_v0 = vsel %vm497_vm1, %v1135_v61, 0.0  ;;  %v1136_v1 = vadd.f32 %v1124_v60, %v2503_v7  ;;  %v2630_v60 = vadd.s32 8, %v2515_v13  ;;  %2078 = vmatpush3.bf16.msra.mxu0 %v2199_v58  ;;  %v1307_v58 = vsub.s32 4, %v2515_v13 }
 0x5f2   : > { %1140 = vadd.xlane.f32.xlu0 %v1139_v0  ;;  %v1148_v4 = vsel %vm497_vm1, %v1138_v3, 0.0 }
 0x5f3   : > { %v1142_v2 = vsel %vm497_vm1, %v1136_v1, 0.0  ;;  %vm464_vm5 = vcmp.eq.s32.totalorder %v2630_v60, 15 }
 0x5f6   : > { %1143 = vadd.xlane.f32.xlu0 %v1142_v2  ;;  %v2638_v2 = vadd.s32 24, %v2515_v13 }
 0x5f8   : > { %vm470_vm6 = vcmp.eq.s32.totalorder %v2638_v2, 31 }
 0x5fa   : > { %1149 = vadd.xlane.f32.xlu0 %v1148_v4 }
 0x67e   : > { %v1147_v9 = vpop.xlane.xlu1 %1146 }
 0x67f   : > { %v1154_v5 = vmul.f32 0.03125, %v1147_v9  ;;  %v1141_v6 = vpop.xlane.xlu0 %1140 }
 0x680   : > { %v1152_v11 = vmul.f32 0.03125, %v1141_v6 }
 0x681   : > { %v1158_v8 = vsub.f32 %v1137_v59, %v1154_v5 }
 0x682   : > { %v1156_v7 = vsub.f32 %v1135_v61, %v1152_v11 }
 0x683   : > { %v1144_v12 = vpop.xlane.xlu0 %1143  ;;  %v1162_v14 = vmul.f32 %v1158_v8, %v1158_v8 }
 0x684   : > { %v1153_v17 = vmul.f32 0.03125, %v1144_v12  ;;  %v1160_v24 = vmul.f32 %v1156_v7, %v1156_v7 }
 0x685   : > { %v1170_v18 = vsel %vm497_vm1, %v1162_v14, 0.0 }
 0x686   : > { %v1157_v19 = vsub.f32 %v1136_v1, %v1153_v17  ;;  %1171 = vadd.xlane.f32.xlu0 %v1170_v18  ;;  %v1164_v28 = vsel %vm497_vm1, %v1160_v24, 0.0  ;;  %v2201_v17 = vld [vmem:[%s2481_s25] sm:$0xff]   ;;  %v2202_v18 = vld [vmem:[%s2481_s25 + $0x8] sm:$0xff]  }
 0x687   : > { %v1150_v10 = vpop.xlane.xlu0 %1149  ;;  %2085 = vmatprep.subr.bf16.mxu1 %v2201_v17 }
 0x688   : > { %v1155_v20 = vmul.f32 0.03125, %v1150_v10  ;;  %v1161_v21 = vmul.f32 %v1157_v19, %v1157_v19  ;;  %2086 = vmatpush3.bf16.msra.mxu1 %v2201_v17 }
 0x689   : > { %2087 = vmatprep.subr.bf16.mxu1 %v2202_v18 }
 0x68a   : > { %v1159_v22 = vsub.f32 %v1138_v3, %v1155_v20  ;;  %v1167_v23 = vsel %vm497_vm1, %v1161_v21, 0.0  ;;  %v2200_v3 = vld [vmem:[%s2476_s11 + $0x28] sm:$0xff]  }
 0x68b   : > { %1168 = vadd.xlane.f32.xlu1 %v1167_v23  ;;  %2079 = vmatprep.subr.bf16.mxu0 %v2200_v3 }
 0x68c   : > { %v1163_v25 = vmul.f32 %v1159_v22, %v1159_v22  ;;  %2080 = vmatpush3.bf16.msra.mxu0 %v2200_v3  ;;  %2088 = vmatpush3.bf16.msra.mxu1 %v2202_v18 }
 0x68e   : > { %v1173_v29 = vsel %vm497_vm1, %v1163_v25, 0.0 }
 0x68f   : > { %1165 = vadd.xlane.f32.xlu1 %v1164_v28  ;;  %1174 = vadd.xlane.f32.xlu0 %v1173_v29  ;;  %v2673_v28 = vadd.s32 16, %v2515_v13 }
 0x691   : > { %vm457_vm9 = vcmp.eq.s32.totalorder %v2673_v28, 16 }
 0x713   : > { %v1172_v32 = vpop.xlane.xlu0 %1171 }
 0x714   : > { %v1178_v33 = vmul.f32 0.03125, %v1172_v32 }
 0x716   : > { %v1182_v34 = vadd.f32 1e-05, %v1178_v33 }
 0x718   : > { %2237 = vrsqrt.f32 %v1182_v34  ;;  %v1169_v35 = vpop.xlane.xlu1 %1168 }
 0x719   : > { %v1177_v36 = vmul.f32 0.03125, %v1169_v35 }
 0x71b   : > { %v1181_v37 = vadd.f32 1e-05, %v1177_v36 }
 0x71c   : > { %v1166_v38 = vpop.xlane.xlu1 %1165  ;;  %v1175_v39 = vpop.xlane.xlu0 %1174 }
 0x71d   : > { %2239 = vrsqrt.f32 %v1181_v37  ;;  %v1176_v40 = vmul.f32 0.03125, %v1166_v38  ;;  %v1179_v41 = vmul.f32 0.03125, %v1175_v39 }
 0x71f   : > { %v1180_v42 = vadd.f32 1e-05, %v1176_v40  ;;  %v1183_v43 = vadd.f32 1e-05, %v1179_v41 }
 0x721   : > { %2241 = vrsqrt.f32 %v1180_v42 }
 0x722   : > { %v2238_v45 = vpop.eup %2237  ;;  %2243 = vrsqrt.f32 %v1183_v43 }
 0x723   : > { %v1190_v46 = vmul.f32 %v2238_v45, %v1158_v8 }
 0x725   : > { %v1198_v51 = vmul.f32 %v1195_v47, %v1190_v46 }
 0x727   : > { %v2240_v49 = vpop.eup %2239  ;;  %v2624_v56 = vadd.f32 %v1203_v50, %v1198_v51 }
 0x728   : > { %v1189_v52 = vmul.f32 %v2240_v49, %v1157_v19 }
 0x729   : > { %v1231_v0 = vrot.slane %v2624_v56, 1  ;;  %v1210_v15 = vrot.slane %v2624_v56, 7 }
 0x72a   : > { %v1197_v54 = vmul.f32 %v1195_v47, %v1189_v52 }
 0x72b   : > { %v2242_v55 = vpop.eup %2241 }
 0x72c   : > { %v2244_v26 = vpop.eup %2243  ;;  %v1188_v27 = vmul.f32 %v2242_v55, %v1156_v7  ;;  %v2626_v57 = vadd.f32 %v1203_v50, %v1197_v54 }
 0x72d   : > { %v1191_v59 = vmul.f32 %v2244_v26, %v1159_v22  ;;  %v2203_v26 = vld [vmem:[%s2481_s25 + $0x10] sm:$0xff]  }
 0x72e   : > { %v1196_v61 = vmul.f32 %v1195_v47, %v1188_v27  ;;  %v1230_v62 = vrot.slane %v2626_v57, 1  ;;  %v1209_v24 = vrot.slane %v2626_v57, 7  ;;  %2089 = vmatprep.subr.bf16.mxu1 %v2203_v26  ;;  %v2204_v27 = vld [vmem:[%s2481_s25 + $0x18] sm:$0xff]  }
 0x72f   : > { %v1199_v63 = vmul.f32 %v1195_v47, %v1191_v59  ;;  %2090 = vmatpush3.bf16.msra.mxu1 %v2203_v26  ;;  %v1308_v59 = vrot.slane %v2521_v16, %v1307_v58 }
 0x730   : > { %v2635_v1 = vadd.f32 %v1203_v50, %v1196_v61  ;;  %v1235_v9 = vsel %vm1233_vm4, %v1230_v62, %v1231_v0  ;;  %v1214_v33 = vsel %vm1212_vm8, %v1209_v24, %v1210_v15  ;;  %2091 = vmatprep.subr.bf16.mxu1 %v2204_v27 }
 0x731   : > { %v2641_v4 = vadd.f32 %v1203_v50, %v1199_v63  ;;  %v1247_v14 = vsel %vm464_vm5, 0.0, %v1235_v9  ;;  %v1227_v47 = vsel %vm457_vm9, 0.0, %v1214_v33 }
 0x732   : > { %v2176_v5 = vpack.i.bf16 %v2626_v57, %v2635_v1  ;;  %v1229_v6 = vrot.slane %v2635_v1, 1  ;;  %v1208_v22 = vrot.slane %v2635_v1, 7 }
 0x733   : > { %v2171_v8 = vpack.i.bf16 %v2641_v4, %v2624_v56  ;;  %v1232_v11 = vrot.slane %v2641_v4, 1  ;;  %v1211_v23 = vrot.slane %v2641_v4, 7  ;;  %2092 = vmatpush3.bf16.msra.mxu1 %v2204_v27 }
 0x734   : > { %2177 = vrot.lane.b32.xlu1 %v2176_v5, %s2353_s10  ;;  %v1236_v12 = vsel %vm1233_vm4, %v1229_v6, %v1230_v62  ;;  %v1215_v35 = vsel %vm1212_vm8, %v1208_v22, %v1209_v24 }
 0x735   : > { %2172 = vrot.lane.b32.xlu0 %v2171_v8, %s2353_s10  ;;  %v2181_v7 = vpack.i.bf16 %v1247_v14, %v1236_v12  ;;  %v1237_v19 = vsel %vm1233_vm4, %v1232_v11, %v1229_v6  ;;  %v1234_v10 = vsel %vm1233_vm4, %v1231_v0, %v1232_v11  ;;  %v1216_v31 = vsel %vm1212_vm8, %v1211_v23, %v1208_v22 }
 0x736   : > { %v1249_v20 = vsel %vm470_vm6, 0.0, %v1237_v19  ;;  %v1225_v36 = vsel %vm451_vm7, 0.0, %v1216_v31  ;;  %v1213_v48 = vsel %vm1212_vm8, %v1210_v15, %v1211_v23 }
 0x737   : > { %v2186_v21 = vpack.i.bf16 %v1249_v20, %v1234_v10 }
 0x738   : > { %2182 = vrot.lane.b32.xlu1 %v2181_v7, %s2350_s24 }
 0x73c   : > { %2187 = vrot.lane.b32.xlu1 %v2186_v21, %s2350_s24 }
 0x7a6   : > { %v2178_v25 = vpop.permute.xlu1 %2177 }
 0x7a7   : > { %v2180_v29 = vunpack.i.h.bf16 %v2178_v25  ;;  %v2179_v30 = vunpack.i.l.bf16 %v2178_v25  ;;  %v2173_v32 = vpop.permute.xlu0 %2172 }
 0x7a8   : > { %v2175_v41 = vunpack.i.h.bf16 %v2173_v32  ;;  %v2174_v42 = vunpack.i.l.bf16 %v2173_v32 }
 0x7a9   : > { %v1282_v39 = vsel %vm497_vm1, %v1225_v36, %v2179_v30  ;;  %v1283_v40 = vsel %vm497_vm1, %v1215_v35, %v2180_v29 }
 0x7aa   : > { %v2183_v34 = vpop.permute.xlu1 %2182  ;;  %v1284_v51 = vsel %vm497_vm1, %v1227_v47, %v2174_v42  ;;  %v1285_v52 = vsel %vm497_vm1, %v1213_v48, %v2175_v41 }
 0x7ab   : > { %v2185_v37 = vunpack.i.h.bf16 %v2183_v34  ;;  %v2184_v38 = vunpack.i.l.bf16 %v2183_v34 }
 0x7ad   : > { %v1288_v43 = vsel %vm1286_vm10, %v1283_v40, %v2185_v37  ;;  %v1287_v44 = vsel %vm1286_vm10, %v1282_v39, %v2184_v38 }
 0x7ae   : > { %v1291_v45 = vpack.c.bf16 %v1288_v43, %v1287_v44  ;;  %v2188_v46 = vpop.permute.xlu1 %2187  ;;  %v1576_v44 = vsub.s32 5, %v2515_v13 }
 0x7af   : > { %v2190_v49 = vunpack.i.h.bf16 %v2188_v46  ;;  %v2189_v50 = vunpack.i.l.bf16 %v2188_v46 }
 0x7b0   : > { %2081 = vmatprep.mubr.msk.bf16.mxu0 %vm1345_vm11, %v1291_v45  ;;  %v1577_v46 = vrot.slane %v2521_v16, %v1576_v44 }
 0x7b1   : > { %v1289_v53 = vsel %vm1286_vm10, %v1284_v51, %v2189_v50  ;;  %v1290_v54 = vsel %vm1286_vm10, %v1285_v52, %v2190_v49 }
 0x7b2   : > { %v1292_v55 = vpack.c.bf16 %v1290_v54, %v1289_v53 }
 0x7b4   : > { %2082 = vmatmul.mubr.msk.bf16.vlgmr.msra.gmra.mrb[20].mxu0 %vm1345_vm11, %v1292_v55 }
 0x887   : > { %v2083_v61 = vpop.f32.mrb[20].mxu0 }
 0x888   : > { %v1395_v62 = vadd.f32 %v2083_v61, %v1308_v59  ;;  %v1386_v63 = vpop.f32.mrb[21].mxu0 }
 0x889   : > { %v1387_v0 = vadd.f32 %v1386_v63, %v1308_v59  ;;  %v2084_v3 = vpop.f32.mrb[22].mxu0 }
 0x88a   : > { %v1398_v9 = vadd.f32 %v2084_v3, %v1308_v59  ;;  %v1389_v5 = vpop.f32.mrb[23].mxu0  ;;  %v1403_v8 = vmax.f32 %v1395_v62, 0.0 }
 0x88b   : > { %v1390_v6 = vadd.f32 %v1389_v5, %v1308_v59  ;;  %v1401_v12 = vmax.f32 %v1387_v0, 0.0 }
 0x88c   : > { %v1404_v11 = vmax.f32 %v1398_v9, 0.0 }
 0x88d   : > { %v1402_v14 = vmax.f32 %v1390_v6, 0.0 }
 0x88e   : > { %v1406_v17 = vpack.c.bf16 %v1404_v11, %v1403_v8 }
 0x88f   : > { %v1405_v18 = vpack.c.bf16 %v1402_v14, %v1401_v12 }
 0x891   : > { %2093 = vmatprep.mubr.msk.bf16.mxu1 %vm1286_vm10, %v1405_v18 }
 0x892   : > { %2094 = vmatmul.mubr.msk.bf16.vlgmr.msra.gmra.mrb[20].mxu1 %vm1286_vm10, %v1406_v17 }
 0x965   : > { %v2095_v7 = vpop.f32.mrb[20].mxu1 }
 0x966   : > { %v1479_v19 = vpop.f32.mrb[21].mxu1  ;;  %v1496_v21 = vrot.slane %v2095_v7, 7 }
 0x967   : > { %v1494_v10 = vrot.slane %v1479_v19, 7  ;;  %1510 = vrot.lane.b32.xlu0 %v1479_v19, %s2350_s24  ;;  %v2096_v20 = vpop.f32.mrb[22].mxu1 }
 0x968   : > { %v1497_v22 = vrot.slane %v2096_v20, 7  ;;  %v1482_v23 = vpop.f32.mrb[23].mxu1 }
 0x969   : > { %v1495_v24 = vrot.slane %v1482_v23, 7  ;;  %1512 = vrot.lane.b32.xlu1 %v1482_v23, %s2350_s24 }
 0x96a   : > { %v1501_v25 = vsel %vm1212_vm8, %v1497_v22, %v1494_v10  ;;  %v1498_v29 = vsel %vm1212_vm8, %v1496_v21, %v1497_v22 }
 0x96b   : > { %1514 = vrot.lane.b32.xlu0 %v2095_v7, %s2350_s24  ;;  %v1499_v30 = vsel %vm1212_vm8, %v1495_v24, %v1496_v21  ;;  %v1500_v31 = vsel %vm1212_vm8, %v1494_v10, %v1495_v24  ;;  %v1502_v15 = vsel %vm451_vm7, 0.0, %v1501_v25 }
 0x96c   : > { %v1504_v32 = vsel %vm457_vm9, 0.0, %v1499_v30 }
 0x96d   : > { %1516 = vrot.lane.b32.xlu1 %v2096_v20, %s2350_s24 }
 0x96f   : > { %1538 = vrot.lane.b32.xlu0 %v1502_v15, %s2353_s10 }
 0x971   : > { %1544 = vrot.lane.b32.xlu1 %v1498_v29, %s2353_s10 }
 0x973   : > { %1542 = vrot.lane.b32.xlu0 %v1504_v32, %s2353_s10 }
 0x975   : > { %1540 = vrot.lane.b32.xlu1 %v1500_v31, %s2353_s10 }
 0x9d9   : > { %v1511_v33 = vpop.permute.xlu0 %1510 }
 0x9da   : > { %v1522_v39 = vrot.slane %v1511_v33, 1 }
 0x9db   : > { %v1513_v34 = vpop.permute.xlu1 %1512 }
 0x9dc   : > { %v1523_v36 = vrot.slane %v1513_v34, 1 }
 0x9dd   : > { %v1515_v35 = vpop.permute.xlu0 %1514 }
 0x9de   : > { %v1524_v37 = vrot.slane %v1515_v35, 1  ;;  %v1528_v60 = vsel %vm1233_vm4, %v1522_v39, %v1523_v36 }
 0x9df   : > { %v1517_v38 = vpop.permute.xlu1 %1516 }
 0x9e0   : > { %v1525_v40 = vrot.slane %v1517_v38, 1  ;;  %v1527_v41 = vsel %vm1233_vm4, %v1523_v36, %v1524_v37 }
 0x9e1   : > { %v1531_v42 = vsel %vm464_vm5, 0.0, %v1527_v41  ;;  %v1539_v47 = vpop.permute.xlu0 %1538 }
 0x9e2   : > { %1560 = vrot.lane.b32.xlu1 %v1531_v42, %s2353_s10  ;;  %v1526_v28 = vsel %vm1233_vm4, %v1524_v37, %v1525_v40  ;;  %v1529_v43 = vsel %vm1233_vm4, %v1525_v40, %v1522_v39  ;;  %v1550_v2 = vadd.f32 %v1539_v47, %v1479_v19 }
 0x9e3   : > { %1562 = vrot.lane.b32.xlu0 %v1526_v28, %s2353_s10  ;;  %v1533_v45 = vsel %vm470_vm6, 0.0, %v1529_v43  ;;  %v1545_v48 = vpop.permute.xlu1 %1544 }
 0x9e4   : > { %v1553_v59 = vadd.f32 %v2096_v20, %v1545_v48 }
 0x9e5   : > { %v1543_v49 = vpop.permute.xlu0 %1542 }
 0x9e6   : > { %1564 = vrot.lane.b32.xlu1 %v1533_v45, %s2353_s10  ;;  %v1552_v61 = vadd.f32 %v2095_v7, %v1543_v49  ;;  %v1660_v49 = vsub.s32 6, %v2515_v13 }
 0x9e7   : > { %1558 = vrot.lane.b32.xlu0 %v1528_v60, %s2353_s10  ;;  %v1541_v50 = vpop.permute.xlu1 %1540 }
 0x9e8   : > { %v1551_v54 = vadd.f32 %v1541_v50, %v1482_v23  ;;  %v1668_v50 = vsub.s32 7, %v2515_v13 }
 0x9eb   : > { %1579 = vrot.lane.b32.xlu0 %v1577_v46, %s2353_s10 }
 0xa54   : > { %v1561_v52 = vpop.permute.xlu1 %1560 }
 0xa55   : > { %v1563_v51 = vpop.permute.xlu0 %1562  ;;  %v1571_v55 = vadd.f32 %v1561_v52, %v1551_v54 }
 0xa56   : > { %v1572_v16 = vadd.f32 %v1563_v51, %v1552_v61  ;;  %v2253_v51 = vld [vmem:[%s2486_s17] sm:$0xff] }
 0xa57   : > { %v1661_v52 = vrot.slane %v2253_v51, %v1660_v49  ;;  %v1669_v54 = vrot.slane %v2253_v51, %v1668_v50 }
 0xa58   : > { %v1565_v27 = vpop.permute.xlu1 %1564 }
 0xa59   : > { %v1559_v53 = vpop.permute.xlu0 %1558  ;;  %v1573_v0 = vadd.f32 %v1565_v27, %v1553_v59 }
 0xa5a   : > { %v1570_v26 = vadd.f32 %v1559_v53, %v1550_v2 }
 0xa5d   : > { %v1580_v58 = vpop.permute.xlu0 %1579 }
 0xa5e   : > { %v1583_v62 = vadd.f32 %v1580_v58, %v1571_v55  ;;  %v1582_v63 = vadd.f32 %v1580_v58, %v1570_v26  ;;  %v1585_v3 = vadd.f32 %v1580_v58, %v1573_v0  ;;  %v1584_v9 = vadd.f32 %v1580_v58, %v1572_v16 }
 0xa60   : > { %1592 = vrot.lane.b32.xlu0 %v1583_v62, %s2348_s22  ;;  %1590 = vrot.lane.b32.xlu1 %v1582_v63, %s2348_s22 }
 0xa64   : > { %1596 = vrot.lane.b32.xlu0 %v1585_v3, %s2348_s22  ;;  %1594 = vrot.lane.b32.xlu1 %v1584_v9, %s2348_s22 }
 0xad2   : > { %v1593_v5 = vpop.permute.xlu0 %1592  ;;  %v1591_v6 = vpop.permute.xlu1 %1590 }
 0xad3   : > { %v1603_v8 = vadd.f32 %v1593_v5, %v2626_v57  ;;  %v1602_v11 = vadd.f32 %v1591_v6, %v2635_v1  ;;  %v2254_v6 = vld [vmem:[#allocation3] sm:$0xff] (!%p1950_p6)  }
 0xad4   : > { %2097 = vmatprep.subr.bf16.mxu0 (!%p1950_p6), %v2254_v6 }
 0xad5   : > { %v1609_v12 = vsel %vm497_vm1, %v1603_v8, 0.0  ;;  %v1606_v14 = vsel %vm497_vm1, %v1602_v11, 0.0  ;;  %2098 = vmatpush3.bf16.msra.mxu0 (!%p1950_p6), %v2254_v6 }
 0xad6   : > { %1610 = vadd.xlane.f32.xlu0 %v1609_v12  ;;  %v1597_v17 = vpop.permute.xlu0 %1596  ;;  %1607 = vadd.xlane.f32.xlu1 %v1606_v14  ;;  %v1595_v18 = vpop.permute.xlu1 %1594  ;;  %v1951_v14 = vld [vmem:[%s2817_s7] ss:$0 sm:$0xff] (!%p1950_p6) }
 0xad7   : > { %v1605_v7 = vadd.f32 %v1597_v17, %v2641_v4  ;;  %v1604_v19 = vadd.f32 %v1595_v18, %v2624_v56 }
 0xad9   : > { %v1615_v10 = vsel %vm497_vm1, %v1605_v7, 0.0  ;;  %v1612_v20 = vsel %vm497_vm1, %v1604_v19, 0.0 }
 0xada   : > { %1616 = vadd.xlane.f32.xlu1 %v1615_v10  ;;  %1613 = vadd.xlane.f32.xlu0 %v1612_v20 }
 0xb63   : > { %v1611_v57 = vpop.xlane.xlu0 %1610  ;;  %v1608_v1 = vpop.xlane.xlu1 %1607 }
 0xb64   : > { %v1619_v21 = vmul.f32 0.03125, %v1611_v57  ;;  %v1618_v22 = vmul.f32 0.03125, %v1608_v1 }
 0xb66   : > { %v1623_v23 = vsub.f32 %v1603_v8, %v1619_v21  ;;  %v1622_v24 = vsub.f32 %v1602_v11, %v1618_v22  ;;  %v2255_v11 = vld [vmem:[#allocation3 + $0x8] sm:$0xff] (!%p1950_p6)  }
 0xb67   : > { %v1614_v25 = vpop.xlane.xlu0 %1613  ;;  %v1617_v29 = vpop.xlane.xlu1 %1616  ;;  %2099 = vmatprep.subr.bf16.mxu0 (!%p1950_p6), %v2255_v11 }
 0xb68   : > { %v1620_v30 = vmul.f32 0.03125, %v1614_v25  ;;  %v1621_v31 = vmul.f32 0.03125, %v1617_v29  ;;  %v1627_v15 = vmul.f32 %v1623_v23, %v1623_v23  ;;  %v1626_v4 = vmul.f32 %v1622_v24, %v1622_v24  ;;  %2100 = vmatpush3.bf16.msra.mxu0 (!%p1950_p6), %v2255_v11 }
 0xb6a   : > { %v1624_v32 = vsub.f32 %v1604_v19, %v1620_v30  ;;  %v1625_v56 = vsub.f32 %v1605_v7, %v1621_v31  ;;  %v1633_v33 = vsel %vm497_vm1, %v1627_v15, 0.0  ;;  %v1630_v34 = vsel %vm497_vm1, %v1626_v4, 0.0 }
 0xb6b   : > { %1634 = vadd.xlane.f32.xlu1 %v1633_v33  ;;  %1631 = vadd.xlane.f32.xlu0 %v1630_v34 }
 0xb6c   : > { %v1628_v35 = vmul.f32 %v1624_v32, %v1624_v32  ;;  %v1629_v36 = vmul.f32 %v1625_v56, %v1625_v56 }
 0xb6e   : > { %v1636_v37 = vsel %vm497_vm1, %v1628_v35, 0.0  ;;  %v1639_v38 = vsel %vm497_vm1, %v1629_v36, 0.0 }
 0xb6f   : > { %1637 = vadd.xlane.f32.xlu0 %v1636_v37  ;;  %1640 = vadd.xlane.f32.xlu1 %v1639_v38 }
 0xbf8   : > { %v1632_v39 = vpop.xlane.xlu0 %1631  ;;  %v1635_v40 = vpop.xlane.xlu1 %1634 }
 0xbf9   : > { %v1642_v41 = vmul.f32 0.03125, %v1632_v39  ;;  %v1643_v42 = vmul.f32 0.03125, %v1635_v40 }
 0xbfb   : > { %v1646_v28 = vadd.f32 1e-05, %v1642_v41  ;;  %v1647_v43 = vadd.f32 1e-05, %v1643_v42 }
 0xbfc   : > { %v1638_v44 = vpop.xlane.xlu0 %1637  ;;  %v1641_v45 = vpop.xlane.xlu1 %1640 }
 0xbfd   : > { %2245 = vrsqrt.f32 %v1646_v28  ;;  %v1644_v60 = vmul.f32 0.03125, %v1638_v44  ;;  %v1645_v46 = vmul.f32 0.03125, %v1641_v45 }
 0xbfe   : > { %2247 = vrsqrt.f32 %v1647_v43 }
 0xbff   : > { %v1648_v47 = vadd.f32 1e-05, %v1644_v60  ;;  %v1649_v48 = vadd.f32 1e-05, %v1645_v46 }
 0xc01   : > { %2249 = vrsqrt.f32 %v1648_v47 }
 0xc02   : > { %2251 = vrsqrt.f32 %v1649_v48 }
 0xc07   : > { %v2246_v53 = vpop.eup %2245 }
 0xc08   : > { %v2248_v2 = vpop.eup %2247  ;;  %v1654_v55 = vmul.f32 %v2246_v53, %v1622_v24 }
 0xc09   : > { %v1655_v26 = vmul.f32 %v2248_v2, %v1623_v23 }
 0xc0a   : > { %v1662_v27 = vmul.f32 %v1661_v52, %v1654_v55 }
 0xc0b   : > { %v2250_v58 = vpop.eup %2249  ;;  %v1663_v59 = vmul.f32 %v1661_v52, %v1655_v26 }
 0xc0c   : > { %v2252_v61 = vpop.eup %2251  ;;  %v1670_v62 = vadd.f32 %v1669_v54, %v1662_v27  ;;  %v1656_v63 = vmul.f32 %v2250_v58, %v1624_v32 }
 0xc0d   : > { %v1671_v16 = vadd.f32 %v1669_v54, %v1663_v59  ;;  %v1657_v0 = vmul.f32 %v2252_v61, %v1625_v56  ;;  %1681 = sbr.rel (%p1950_p6) target bundleno = 3311 (0xcef), region = 64 }
 0xc0e   : > { %1674 = vst.msk [vmem:[#allocation2] sm:$0xff] %vm497_vm1, %v1670_v62  ;;  %v1664_v3 = vmul.f32 %v1661_v52, %v1656_v63 }
 0xc0f   : > { %1675 = vst.msk [vmem:[#allocation2 + $0x8] sm:$0xff] %vm497_vm1, %v1671_v16  ;;  %v1665_v13 = vmul.f32 %v1661_v52, %v1657_v0  ;;  %v1682_v8 = vpack.c.bf16 (!%p1950_p6), %v1671_v16, %v1670_v62 }
 0xc10   : > { %v1672_v9 = vadd.f32 %v1669_v54, %v1664_v3 }
 0xc11   : > { %v1673_v5 = vadd.f32 %v1669_v54, %v1665_v13  ;;  %2101 = vmatprep.mubr.msk.bf16.mxu0 (!%p1950_p6), %vm497_vm1, %v1682_v8 }
 0xc12   : > { %1676 = vst.msk [vmem:[#allocation2 + $0x10] sm:$0xff] %vm497_vm1, %v1672_v9 }
 0xc13   : > { %1677 = vst.msk [vmem:[#allocation2 + $0x18] sm:$0xff] %vm497_vm1, %v1673_v5  ;;  %v1683_v12 = vpack.c.bf16 (!%p1950_p6), %v1673_v5, %v1672_v9 }
 0xc15   : > { %2102 = vmatmul.mubr.msk.bf16.vlgmr.msra.gmra.mrb[0].mxu0 %vm497_vm1, %v1683_v12 }
 0xce8   : > { %v2103_v17 = vpop.f32.mrb[0].mxu0 }
 0xce9   : > { %v1756_v18 = vadd.f32 %v2103_v17, %v1951_v14  ;;  %v1747_v7 = vpop.f32.mrb[1].mxu0 }
 0xcea   : > { %v1748_v19 = vadd.f32 %v1951_v14, %v1747_v7  ;;  %v2104_v10 = vpop.f32.mrb[2].mxu0 }
 0xceb   : > { %1764 = vst [vmem:[#allocation6 + $0x10] sm:$0xff] %v1756_v18  ;;  %v1759_v20 = vadd.f32 %v2104_v10, %v1951_v14  ;;  %v1750_v57 = vpop.f32.mrb[3].mxu0 }
 0xcec   : > { %1762 = vst [vmem:[#allocation6] sm:$0xff] %v1748_v19  ;;  %v1751_v1 = vadd.f32 %v1951_v14, %v1750_v57 }
 0xced   : > { %1765 = vst [vmem:[#allocation6 + $0x18] sm:$0xff] %v1759_v20 }
 0xcee   : > { %1763 = vst [vmem:[#allocation6 + $0x8] sm:$0xff] %v1751_v1 }
 0xcef PF: > { %s2828_s27 = sadd.s32 4294967295, %s2340_s29   ;;  %s2354_s15 = smov [#allocation6]  }
 0xcf0   : > { %p2775_p8 = scmp.eq.s32.totalorder %s2828_s27, 1  ;;  %s1776_s13 = sshll.u32 %s2354_s15, 4  ;;  %s1777_s13 = int_to_ptr.vmem [resolvable:$true] %s1776_s13 }
 0xcf1   : > { %s2284_s16 = scalar_lea.vmem %s1777_s13, 512  ;;  %p2291_p13 = scmp.lt.s32.totalorder %s1777_s13, %s1777_s13 }
 0xcf2   : > { %p2285_p10 = scmp.ne.s32.totalorder %s1777_s13, %s2284_s16  ;;  %p2292_p0 = scmp.lt.s32.totalorder %s2284_s16, %s2284_s16 }
 0xcf4   : > { %p2286_p11 = pnand %p2285_p10, %p2775_p8  ;;  %p2293_p1 = por %p2292_p0, %p2291_p13 }
 0xcf6   : > { %p2287_p12 = pneg %p2286_p11 }
 0xcf8   : > { %p2294_p2 = pnand %p2293_p1, %p2287_p12 }
 0xcfa   : > { %2297 = shalt.err (!%p2294_p2)
}
 0xcfb   : > { %s2298_s21 = scalar_lea.hbm %s2818_s8, 512 }
 0xcfc   : > { %p2299_p5 = scmp.ne.s32.totalorder %s2818_s8, %s2298_s21  ;;  %p2304_p3 = scmp.lt.u32.totalorder %s2298_s21, %s2818_s8 }
 0xcfe   : > { %p2300_p7 = pnand %p2299_p5, %p2775_p8 }
 0xd00   : > { %p2301_p9 = pneg %p2300_p7 }
 0xd02   : > { %p2306_p4 = pnand %p2304_p3, %p2301_p9 }
 0xd04   : > { %2309 = shalt.err (!%p2306_p4)
}
 0xd05   : > { %s2355_s23 = smov 128   ;;  %s2356_s24 = smov 8  }
 0xd06   : > { %2111 = dma.vmem_to_hbm [thread:$0]  (%p2775_p8), %s1777_s13, 512, %s2818_s8, [#allocation5], %s2355_s23, %s2355_s23, %s2356_s24  }
 0xd07   : > { %2327 = dma.done.wait (%p2775_p8), [#allocation5], 512  }
 0xd08   : > { %2329 = vsyncadd (%p2775_p8), [#allocation5], 4294966784 }
 0xd09 PF: > { %s20_s29 = sadd.s32 1, %s2340_s29   ;;  %s2830_s27 = smov %s2336_s28 }
 0xd0a   : > { %p17_p6 = scmp.ge.s32.totalorder %s20_s29, 4   ;;  %s2831_s28 = smov %s2833_s9 }
 0xd0c   :  { %19 = sbr.rel (!%p17_p6) target bundleno = 3 (0x3), region = 108 }
 0xd13   :  { %1792 = vsyncpa [#allocation4], 1 }
 0xd14   :  { %1794 = vsyncpa [#allocation4 + $0x1], 1 }
 0xd15   :  { %1795 = vsyncpa [#allocation5], 1 }
 0xd16   :  { %1797 = vsyncpa [#allocation5 + $0x1], 1 }

</bundles_post_ra>
